<compile_context>
chip_gen: v7x
topology: tpu7x:2x2x1
jax: 0.10.0
libtpu: 0.0.40
codegen_flags: <defaults>
</compile_context>

<pallas_src>
import math
import jax
import jax.numpy as jnp
from jax.experimental import pallas as pl
from jax.experimental.pallas import tpu as pltpu


def lstm_attn_kernel(x_ref, w_ih_ref, w_hh_ref, b_lstm_ref,
                     wqkv_ref, bqkv_ref, fc_w_ref, fc_b_ref,
                     out_ref, hs_ref):
    x = x_ref[...]                              # (bb, T, D)    bf16
    w_ih = w_ih_ref[...]                        # (D, 4*Hp)     bf16
    w_hh = w_hh_ref[...]                        # (Hp, 4*Hp)    bf16
    b_lstm = b_lstm_ref[...]                    # (1, 4*Hp)     f32 (b_ih + b_hh)

    bb, T, _ = x.shape
    Hp = w_hh_ref.shape[0]

    # ---- LSTM (batch_first, single layer), PyTorch gate order: i, f, g, o ----
    # Input projection for all timesteps at once (one MXU pass, f32 accum).
    gx = jnp.einsum('btd,dg->btg', x, w_ih,
                    preferred_element_type=jnp.float32) + b_lstm    # (bb, T, 4Hp)

    h = jnp.zeros((bb, Hp), jnp.float32)
    c = jnp.zeros((bb, Hp), jnp.float32)
    # T is a small static constant -> unrolled recurrence.
    # TODO(synk): switch to lax.fori_loop(..., unroll=k) + flash-style tiled
    # attention if T grows beyond a handful of steps.
    for t in range(T):
        gates = gx[:, t, :] + jnp.dot(h.astype(jnp.bfloat16), w_hh,
                                      preferred_element_type=jnp.float32)
        # All gate slices are 128-lane aligned (Hp is a multiple of 128).
        i_g = jax.nn.sigmoid(gates[:, 0 * Hp:1 * Hp])
        f_g = jax.nn.sigmoid(gates[:, 1 * Hp:2 * Hp])
        g_g = jnp.tanh(gates[:, 2 * Hp:3 * Hp])
        o_g = jax.nn.sigmoid(gates[:, 3 * Hp:4 * Hp])
        c = f_g * c + i_g * g_g
        h = o_g * jnp.tanh(c)
        hs_ref[:, t, :] = h                    # per-step vst into VMEM scratch

    lstm_bf = hs_ref[...].astype(jnp.bfloat16)  # (bb, T, Hp)

    # ---- Self attention (fused QKV; 1/sqrt(H) pre-folded into Q columns) ----
    qkv = jnp.einsum('bth,hk->btk', lstm_bf, wqkv_ref[...],
                     preferred_element_type=jnp.float32) + bqkv_ref[...]
    q = qkv[:, :, 0 * Hp:1 * Hp]
    k = qkv[:, :, 1 * Hp:2 * Hp]
    v = qkv[:, :, 2 * Hp:3 * Hp]

    scores = jnp.einsum('bqh,bkh->bqk', q.astype(jnp.bfloat16),
                        k.astype(jnp.bfloat16),
                        preferred_element_type=jnp.float32)          # (bb, T, T)
    m = jnp.max(scores, axis=-1, keepdims=True)
    e = jnp.exp(scores - m)
    denom = jnp.sum(e, axis=-1, keepdims=True)
    p = e * pl.reciprocal(denom, approx=True)                        # EUP, not VALU

    # ---- mean over seq folded into the value contraction + final FC ----
    #   mean_q(P @ V) == (mean_q P) @ V   (exact by linearity)
    w_mean = jnp.sum(p, axis=1) * (1.0 / T)                          # (bb, T)
    pooled = jnp.sum(w_mean[:, :, None] * v, axis=1)                 # (bb, Hp) f32

    out = jnp.dot(pooled.astype(jnp.bfloat16), fc_w_ref[...],
                  preferred_element_type=jnp.float32) + fc_b_ref[...]
    out_ref[...] = out.astype(out_ref.dtype)


def _pad_gate_cols(w, h, hp, n_blocks):
    """(rows, n_blocks*h) -> (rows, n_blocks*hp): zero-pad each gate block."""
    rows = w.shape[0]
    w = w.reshape(rows, n_blocks, h)
    w = jnp.pad(w, ((0, 0), (0, 0), (0, hp - h)))
    return w.reshape(rows, n_blocks * hp)


def lstm_self_attention_forward(x, params, *, block_b=128):
    B, T, D = x.shape
    H = params['w_hh'].shape[0]
    O = params['fc_w'].shape[1]
    Hp = max(128, pl.cdiv(H, 128) * 128)          # lane-aligned hidden width
    O_pad = max(128, pl.cdiv(O, 128) * 128)       # lane-dense output slab
    H4, H3 = 4 * Hp, 3 * Hp

    # ---- weight preprocessing (done once in the XLA wrapper) ----
    # Zero-padding is exact: padded hidden lanes of h / c / q / k / v remain 0.
    scale = 1.0 / math.sqrt(H)

    w_ih = _pad_gate_cols(params['w_ih'], H, Hp, 4)                        # (D, 4Hp)
    w_hh = jnp.pad(_pad_gate_cols(params['w_hh'], H, Hp, 4),
                   ((0, Hp - H), (0, 0)))                                  # (Hp, 4Hp)
    b_lstm = _pad_gate_cols(params['b_lstm'], H, Hp, 4)                    # (1, 4Hp)

    def pad2(w):
        return jnp.pad(w, ((0, Hp - w.shape[0]), (0, Hp - w.shape[1])))

    def padb(b):
        return jnp.pad(b, ((0, 0), (0, Hp - b.shape[1])))

    wqkv = jnp.concatenate([pad2(params['wq'] * scale),
                            pad2(params['wk']),
                            pad2(params['wv'])], axis=1)                   # (Hp, 3Hp)
    bqkv = jnp.concatenate([padb(params['bq'] * scale),
                            padb(params['bk']),
                            padb(params['bv'])], axis=1)                   # (1, 3Hp)
    fc_w = jnp.zeros((Hp, O_pad), jnp.float32).at[:H, :O].set(params['fc_w'])
    fc_b = jnp.zeros((1, O_pad), jnp.float32).at[:, :O].set(params['fc_b'])

    # bf16 MXU operands (f32 accumulation inside the kernel); biases stay f32.
    x_bf = x.astype(jnp.bfloat16)
    w_ih = w_ih.astype(jnp.bfloat16)
    w_hh = w_hh.astype(jnp.bfloat16)
    wqkv = wqkv.astype(jnp.bfloat16)
    fc_w = fc_w.astype(jnp.bfloat16)
    b_lstm = b_lstm.astype(jnp.float32)
    bqkv = bqkv.astype(jnp.float32)
    fc_b = fc_b.astype(jnp.float32)

    # ---- batch tiling ----
    if B <= block_b:
        bb, B_pad = B, B
    else:
        bb = block_b
        B_pad = pl.cdiv(B, bb) * bb
    if B_pad != B:
        x_bf = jnp.pad(x_bf, ((0, B_pad - B), (0, 0), (0, 0)))
    grid = (B_pad // bb,)

    # ---- cost estimate (advisory for the XLA scheduler) ----
    flops = (2 * B_pad * T * (D * H4 + Hp * H4 + Hp * H3 + T * Hp + Hp)
             + 2 * B_pad * Hp * O_pad)
    transcendentals = B_pad * T * (5 * Hp + T + 1)
    bytes_accessed = (B_pad * T * D * 2
                      + (D * H4 + Hp * H4 + Hp * H3 + Hp * O_pad) * 2
                      + (H4 + H3 + O_pad) * 4
                      + B_pad * O_pad * 4)

    grid_spec = pltpu.PrefetchScalarGridSpec(
        num_scalar_prefetch=0,
        grid=grid,
        in_specs=[
            pl.BlockSpec((bb, T, D),  lambda b: (b, 0, 0)),   # x: batch-tiled
            pl.BlockSpec((D, H4),     lambda b: (0, 0)),      # weights: resident
            pl.BlockSpec((Hp, H4),    lambda b: (0, 0)),
            pl.BlockSpec((1, H4),     lambda b: (0, 0)),
            pl.BlockSpec((Hp, H3),    lambda b: (0, 0)),
            pl.BlockSpec((1, H3),     lambda b: (0, 0)),
            pl.BlockSpec((Hp, O_pad), lambda b: (0, 0)),
            pl.BlockSpec((1, O_pad),  lambda b: (0, 0)),
        ],
        out_specs=pl.BlockSpec((bb, O_pad), lambda b: (b, 0)),
        scratch_shapes=[pltpu.VMEM((bb, T, Hp), jnp.float32)],  # lstm_out buffer
    )

    out_padded = pl.pallas_call(
        lstm_attn_kernel,
        out_shape=jax.ShapeDtypeStruct((B_pad, O_pad), jnp.float32),
        grid_spec=grid_spec,
        compiler_params=pltpu.CompilerParams(
            dimension_semantics=("parallel",),
            vmem_limit_bytes=32 * 1024 * 1024,   # fits v7x 64 MiB with headroom
        ),
        cost_estimate=pl.CostEstimate(
            flops=int(flops),
            transcendentals=int(transcendentals),
            bytes_accessed=int(bytes_accessed),
        ),
    )(x_bf, w_ih, w_hh, b_lstm, wqkv, bqkv, fc_w, fc_b)

    return out_padded[:B, :O]


def init_params(key, input_dim, hidden_dim, output_dim):
    """Deterministic synthetic parameters (PyTorch-style uniform init)."""
    ks = jax.random.split(key, 12)
    kscale = 1.0 / math.sqrt(hidden_dim)

    def u(k, shape):
        return jax.random.uniform(k, shape, jnp.float32, -kscale, kscale)

    # LSTM weights stored transposed relative to PyTorch: x_t @ w_ih + h @ w_hh
    w_ih = u(ks[0], (input_dim, 4 * hidden_dim))
    w_hh = u(ks[1], (hidden_dim, 4 * hidden_dim))
    b_ih = u(ks[2], (1, 4 * hidden_dim))
    b_hh = u(ks[3], (1, 4 * hidden_dim))

    return dict(
        w_ih=w_ih, w_hh=w_hh, b_lstm=b_ih + b_hh,
        wq=u(ks[4], (hidden_dim, hidden_dim)), bq=u(ks[5], (1, hidden_dim)),
        wk=u(ks[6], (hidden_dim, hidden_dim)), bk=u(ks[7], (1, hidden_dim)),
        wv=u(ks[8], (hidden_dim, hidden_dim)), bv=u(ks[9], (1, hidden_dim)),
        fc_w=u(ks[10], (hidden_dim, output_dim)), fc_b=u(ks[11], (1, output_dim)),
    )


if __name__ == "__main__":
    B, T = 2, 8                 # batch, sequence length
    input_dim, hidden_dim, output_dim = 4, 32, 4

    key = jax.random.PRNGKey(0)
    kx, kp = jax.random.split(key)
    x = jax.random.normal(kx, (B, T, input_dim), jnp.float32)
    params = init_params(kp, input_dim, hidden_dim, output_dim)

    out = lstm_self_attention_forward(x, params)
    out = jax.block_until_ready(out)
    assert out.shape == (B, output_dim)
    assert bool(jnp.all(jnp.isfinite(out)))
    print("KERNEL_OK")
</pallas_src>

<mosaic_0001>
module attributes {stable_mosaic.version = 11 : i64} {
  func.func @lstm_attn_kernel(%arg0: i32, %arg1: memref<2x8x4xbf16, #tpu.memory_space<vmem>>, %arg2: memref<4x512xbf16, #tpu.memory_space<vmem>>, %arg3: memref<128x512xbf16, #tpu.memory_space<vmem>>, %arg4: memref<1x512xf32, #tpu.memory_space<vmem>>, %arg5: memref<128x384xbf16, #tpu.memory_space<vmem>>, %arg6: memref<1x384xf32, #tpu.memory_space<vmem>>, %arg7: memref<128x128xbf16, #tpu.memory_space<vmem>>, %arg8: memref<1x128xf32, #tpu.memory_space<vmem>>, %arg9: memref<2x128xf32, #tpu.memory_space<vmem>>, %arg10: memref<2x8x128xf32, #tpu.memory_space<vmem>>) attributes {dimension_semantics = [#tpu.dimension_semantics<parallel>], iteration_bounds = array<i64: 1>, scalar_prefetch = 0 : i64, scratch_operands = 1 : i64, tpu.core_type = #tpu.core_type<tc>, window_params = [{transform_indices = @transform_0, window_bounds = array<i64: 2, 8, 4>}, {pipeline_mode = #tpu.pipeline_mode<synchronous>, transform_indices = @transform_1, window_bounds = array<i64: 4, 512>}, {pipeline_mode = #tpu.pipeline_mode<synchronous>, transform_indices = @transform_2, window_bounds = array<i64: 128, 512>}, {pipeline_mode = #tpu.pipeline_mode<synchronous>, transform_indices = @transform_3, window_bounds = array<i64: 1, 512>}, {pipeline_mode = #tpu.pipeline_mode<synchronous>, transform_indices = @transform_4, window_bounds = array<i64: 128, 384>}, {pipeline_mode = #tpu.pipeline_mode<synchronous>, transform_indices = @transform_5, window_bounds = array<i64: 1, 384>}, {pipeline_mode = #tpu.pipeline_mode<synchronous>, transform_indices = @transform_6, window_bounds = array<i64: 128, 128>}, {pipeline_mode = #tpu.pipeline_mode<synchronous>, transform_indices = @transform_7, window_bounds = array<i64: 1, 128>}, {transform_indices = @transform_8, window_bounds = array<i64: 2, 128>}]} {
    %c0 = arith.constant 0 : index
    %c0_0 = arith.constant 0 : index
    %c0_1 = arith.constant 0 : index
    %0 = vector.load %arg1[%c0, %c0_0, %c0_1] : memref<2x8x4xbf16, #tpu.memory_space<vmem>>, vector<2x8x4xbf16>
    %c0_2 = arith.constant 0 : index
    %c0_3 = arith.constant 0 : index
    %1 = vector.load %arg2[%c0_2, %c0_3] : memref<4x512xbf16, #tpu.memory_space<vmem>>, vector<4x512xbf16>
    %c0_4 = arith.constant 0 : index
    %c0_5 = arith.constant 0 : index
    %2 = vector.load %arg3[%c0_4, %c0_5] : memref<128x512xbf16, #tpu.memory_space<vmem>>, vector<128x512xbf16>
    %c0_6 = arith.constant 0 : index
    %c0_7 = arith.constant 0 : index
    %3 = vector.load %arg4[%c0_6, %c0_7] : memref<1x512xf32, #tpu.memory_space<vmem>>, vector<1x512xf32>
    "tpu.trace_start"() <{level = 10 : i32, message = "btd,dg->btg"}> : () -> ()
    %cst = arith.constant dense<0.000000e+00> : vector<2x8x512xf32>
    %4 = tpu.matmul %0, %1, %cst {dimension_numbers = #tpu.dot_dimension_numbers<[2], [0], [0, 1], [1], [0, 0, 0, 1, 1, 1], [], []>} : vector<2x8x4xbf16>, vector<4x512xbf16>, vector<2x8x512xf32> -> vector<2x8x512xf32>
    "tpu.trace_stop"() : () -> ()
    %5 = vector.shape_cast %3 : vector<1x512xf32> to vector<1x1x512xf32>
    %6 = vector.broadcast %5 : vector<1x1x512xf32> to vector<2x8x512xf32>
    %7 = arith.addf %4, %6 : vector<2x8x512xf32>
    %cst_8 = arith.constant 0.000000e+00 : f32
    %8 = vector.broadcast %cst_8 : f32 to vector<2x128xf32>
    %cst_9 = arith.constant 0.000000e+00 : f32
    %9 = vector.broadcast %cst_9 : f32 to vector<2x128xf32>
    %10 = vector.extract_strided_slice %7 {offsets = [0, 0, 0], sizes = [2, 1, 512], strides = [1, 1, 1]} : vector<2x8x512xf32> to vector<2x1x512xf32>
    %11 = vector.shape_cast %10 : vector<2x1x512xf32> to vector<2x512xf32>
    %12 = arith.truncf %8 : vector<2x128xf32> to vector<2x128xbf16>
    %cst_10 = arith.constant dense<0.000000e+00> : vector<2x512xf32>
    %13 = tpu.matmul %12, %2, %cst_10 {dimension_numbers = #tpu.dot_dimension_numbers<[1], [0], [0], [1], [0, 0, 1, 1], [], []>} : vector<2x128xbf16>, vector<128x512xbf16>, vector<2x512xf32> -> vector<2x512xf32>
    %14 = arith.addf %11, %13 : vector<2x512xf32>
    %15 = vector.extract_strided_slice %14 {offsets = [0, 0], sizes = [2, 128], strides = [1, 1]} : vector<2x512xf32> to vector<2x128xf32>
    %16 = arith.negf %15 : vector<2x128xf32>
    %17 = math.exp %16 : vector<2x128xf32>
    %cst_11 = arith.constant 1.000000e+00 : f32
    %18 = vector.broadcast %cst_11 : f32 to vector<2x128xf32>
    %19 = arith.addf %18, %17 : vector<2x128xf32>
    %20 = arith.divf %18, %19 : vector<2x128xf32>
    %21 = vector.extract_strided_slice %14 {offsets = [0, 128], sizes = [2, 128], strides = [1, 1]} : vector<2x512xf32> to vector<2x128xf32>
    %22 = arith.negf %21 : vector<2x128xf32>
    %23 = math.exp %22 : vector<2x128xf32>
    %cst_12 = arith.constant 1.000000e+00 : f32
    %24 = vector.broadcast %cst_12 : f32 to vector<2x128xf32>
    %25 = arith.addf %24, %23 : vector<2x128xf32>
    %26 = arith.divf %24, %25 : vector<2x128xf32>
    %27 = vector.extract_strided_slice %14 {offsets = [0, 256], sizes = [2, 128], strides = [1, 1]} : vector<2x512xf32> to vector<2x128xf32>
    %28 = math.tanh %27 : vector<2x128xf32>
    %29 = vector.extract_strided_slice %14 {offsets = [0, 384], sizes = [2, 128], strides = [1, 1]} : vector<2x512xf32> to vector<2x128xf32>
    %30 = arith.negf %29 : vector<2x128xf32>
    %31 = math.exp %30 : vector<2x128xf32>
    %cst_13 = arith.constant 1.000000e+00 : f32
    %32 = vector.broadcast %cst_13 : f32 to vector<2x128xf32>
    %33 = arith.addf %32, %31 : vector<2x128xf32>
    %34 = arith.divf %32, %33 : vector<2x128xf32>
    %35 = arith.mulf %26, %9 : vector<2x128xf32>
    %36 = arith.mulf %20, %28 : vector<2x128xf32>
    %37 = arith.addf %35, %36 : vector<2x128xf32>
    %38 = math.tanh %37 : vector<2x128xf32>
    %39 = arith.mulf %34, %38 : vector<2x128xf32>
    %c0_14 = arith.constant 0 : index
    %c0_15 = arith.constant 0 : index
    %c0_16 = arith.constant 0 : index
    %40 = vector.load %arg10[%c0_14, %c0_15, %c0_16] : memref<2x8x128xf32, #tpu.memory_space<vmem>>, vector<2x1x128xf32>
    %41 = vector.shape_cast %40 : vector<2x1x128xf32> to vector<2x128xf32>
    %42 = vector.shape_cast %39 : vector<2x128xf32> to vector<2x1x128xf32>
    tpu.vector_store %arg10[%c0_14, %c0_15, %c0_16], %42 {strides = array<i32>} : memref<2x8x128xf32, #tpu.memory_space<vmem>>, vector<2x1x128xf32>,
    %43 = vector.extract_strided_slice %7 {offsets = [0, 1, 0], sizes = [2, 1, 512], strides = [1, 1, 1]} : vector<2x8x512xf32> to vector<2x1x512xf32>
    %44 = vector.shape_cast %43 : vector<2x1x512xf32> to vector<2x512xf32>
    %45 = arith.truncf %39 : vector<2x128xf32> to vector<2x128xbf16>
    %cst_17 = arith.constant dense<0.000000e+00> : vector<2x512xf32>
    %46 = tpu.matmul %45, %2, %cst_17 {dimension_numbers = #tpu.dot_dimension_numbers<[1], [0], [0], [1], [0, 0, 1, 1], [], []>} : vector<2x128xbf16>, vector<128x512xbf16>, vector<2x512xf32> -> vector<2x512xf32>
    %47 = arith.addf %44, %46 : vector<2x512xf32>
    %48 = vector.extract_strided_slice %47 {offsets = [0, 0], sizes = [2, 128], strides = [1, 1]} : vector<2x512xf32> to vector<2x128xf32>
    %49 = arith.negf %48 : vector<2x128xf32>
    %50 = math.exp %49 : vector<2x128xf32>
    %cst_18 = arith.constant 1.000000e+00 : f32
    %51 = vector.broadcast %cst_18 : f32 to vector<2x128xf32>
    %52 = arith.addf %51, %50 : vector<2x128xf32>
    %53 = arith.divf %51, %52 : vector<2x128xf32>
    %54 = vector.extract_strided_slice %47 {offsets = [0, 128], sizes = [2, 128], strides = [1, 1]} : vector<2x512xf32> to vector<2x128xf32>
    %55 = arith.negf %54 : vector<2x128xf32>
    %56 = math.exp %55 : vector<2x128xf32>
    %cst_19 = arith.constant 1.000000e+00 : f32
    %57 = vector.broadcast %cst_19 : f32 to vector<2x128xf32>
    %58 = arith.addf %57, %56 : vector<2x128xf32>
    %59 = arith.divf %57, %58 : vector<2x128xf32>
    %60 = vector.extract_strided_slice %47 {offsets = [0, 256], sizes = [2, 128], strides = [1, 1]} : vector<2x512xf32> to vector<2x128xf32>
    %61 = math.tanh %60 : vector<2x128xf32>
    %62 = vector.extract_strided_slice %47 {offsets = [0, 384], sizes = [2, 128], strides = [1, 1]} : vector<2x512xf32> to vector<2x128xf32>
    %63 = arith.negf %62 : vector<2x128xf32>
    %64 = math.exp %63 : vector<2x128xf32>
    %cst_20 = arith.constant 1.000000e+00 : f32
    %65 = vector.broadcast %cst_20 : f32 to vector<2x128xf32>
    %66 = arith.addf %65, %64 : vector<2x128xf32>
    %67 = arith.divf %65, %66 : vector<2x128xf32>
    %68 = arith.mulf %59, %37 : vector<2x128xf32>
    %69 = arith.mulf %53, %61 : vector<2x128xf32>
    %70 = arith.addf %68, %69 : vector<2x128xf32>
    %71 = math.tanh %70 : vector<2x128xf32>
    %72 = arith.mulf %67, %71 : vector<2x128xf32>
    %c0_21 = arith.constant 0 : index
    %c1 = arith.constant 1 : index
    %c0_22 = arith.constant 0 : index
    %73 = vector.load %arg10[%c0_21, %c1, %c0_22] : memref<2x8x128xf32, #tpu.memory_space<vmem>>, vector<2x1x128xf32>
    %74 = vector.shape_cast %73 : vector<2x1x128xf32> to vector<2x128xf32>
    %75 = vector.shape_cast %72 : vector<2x128xf32> to vector<2x1x128xf32>
    tpu.vector_store %arg10[%c0_21, %c1, %c0_22], %75 {strides = array<i32>} : memref<2x8x128xf32, #tpu.memory_space<vmem>>, vector<2x1x128xf32>,
    %76 = vector.extract_strided_slice %7 {offsets = [0, 2, 0], sizes = [2, 1, 512], strides = [1, 1, 1]} : vector<2x8x512xf32> to vector<2x1x512xf32>
    %77 = vector.shape_cast %76 : vector<2x1x512xf32> to vector<2x512xf32>
    %78 = arith.truncf %72 : vector<2x128xf32> to vector<2x128xbf16>
    %cst_23 = arith.constant dense<0.000000e+00> : vector<2x512xf32>
    %79 = tpu.matmul %78, %2, %cst_23 {dimension_numbers = #tpu.dot_dimension_numbers<[1], [0], [0], [1], [0, 0, 1, 1], [], []>} : vector<2x128xbf16>, vector<128x512xbf16>, vector<2x512xf32> -> vector<2x512xf32>
    %80 = arith.addf %77, %79 : vector<2x512xf32>
    %81 = vector.extract_strided_slice %80 {offsets = [0, 0], sizes = [2, 128], strides = [1, 1]} : vector<2x512xf32> to vector<2x128xf32>
    %82 = arith.negf %81 : vector<2x128xf32>
    %83 = math.exp %82 : vector<2x128xf32>
    %cst_24 = arith.constant 1.000000e+00 : f32
    %84 = vector.broadcast %cst_24 : f32 to vector<2x128xf32>
    %85 = arith.addf %84, %83 : vector<2x128xf32>
    %86 = arith.divf %84, %85 : vector<2x128xf32>
    %87 = vector.extract_strided_slice %80 {offsets = [0, 128], sizes = [2, 128], strides = [1, 1]} : vector<2x512xf32> to vector<2x128xf32>
    %88 = arith.negf %87 : vector<2x128xf32>
    %89 = math.exp %88 : vector<2x128xf32>
    %cst_25 = arith.constant 1.000000e+00 : f32
    %90 = vector.broadcast %cst_25 : f32 to vector<2x128xf32>
    %91 = arith.addf %90, %89 : vector<2x128xf32>
    %92 = arith.divf %90, %91 : vector<2x128xf32>
    %93 = vector.extract_strided_slice %80 {offsets = [0, 256], sizes = [2, 128], strides = [1, 1]} : vector<2x512xf32> to vector<2x128xf32>
    %94 = math.tanh %93 : vector<2x128xf32>
    %95 = vector.extract_strided_slice %80 {offsets = [0, 384], sizes = [2, 128], strides = [1, 1]} : vector<2x512xf32> to vector<2x128xf32>
    %96 = arith.negf %95 : vector<2x128xf32>
    %97 = math.exp %96 : vector<2x128xf32>
    %cst_26 = arith.constant 1.000000e+00 : f32
    %98 = vector.broadcast %cst_26 : f32 to vector<2x128xf32>
    %99 = arith.addf %98, %97 : vector<2x128xf32>
    %100 = arith.divf %98, %99 : vector<2x128xf32>
    %101 = arith.mulf %92, %70 : vector<2x128xf32>
    %102 = arith.mulf %86, %94 : vector<2x128xf32>
    %103 = arith.addf %101, %102 : vector<2x128xf32>
    %104 = math.tanh %103 : vector<2x128xf32>
    %105 = arith.mulf %100, %104 : vector<2x128xf32>
    %c0_27 = arith.constant 0 : index
    %c2 = arith.constant 2 : index
    %c0_28 = arith.constant 0 : index
    %106 = vector.load %arg10[%c0_27, %c2, %c0_28] : memref<2x8x128xf32, #tpu.memory_space<vmem>>, vector<2x1x128xf32>
    %107 = vector.shape_cast %106 : vector<2x1x128xf32> to vector<2x128xf32>
    %108 = vector.shape_cast %105 : vector<2x128xf32> to vector<2x1x128xf32>
    tpu.vector_store %arg10[%c0_27, %c2, %c0_28], %108 {strides = array<i32>} : memref<2x8x128xf32, #tpu.memory_space<vmem>>, vector<2x1x128xf32>,
    %109 = vector.extract_strided_slice %7 {offsets = [0, 3, 0], sizes = [2, 1, 512], strides = [1, 1, 1]} : vector<2x8x512xf32> to vector<2x1x512xf32>
    %110 = vector.shape_cast %109 : vector<2x1x512xf32> to vector<2x512xf32>
    %111 = arith.truncf %105 : vector<2x128xf32> to vector<2x128xbf16>
    %cst_29 = arith.constant dense<0.000000e+00> : vector<2x512xf32>
    %112 = tpu.matmul %111, %2, %cst_29 {dimension_numbers = #tpu.dot_dimension_numbers<[1], [0], [0], [1], [0, 0, 1, 1], [], []>} : vector<2x128xbf16>, vector<128x512xbf16>, vector<2x512xf32> -> vector<2x512xf32>
    %113 = arith.addf %110, %112 : vector<2x512xf32>
    %114 = vector.extract_strided_slice %113 {offsets = [0, 0], sizes = [2, 128], strides = [1, 1]} : vector<2x512xf32> to vector<2x128xf32>
    %115 = arith.negf %114 : vector<2x128xf32>
    %116 = math.exp %115 : vector<2x128xf32>
    %cst_30 = arith.constant 1.000000e+00 : f32
    %117 = vector.broadcast %cst_30 : f32 to vector<2x128xf32>
    %118 = arith.addf %117, %116 : vector<2x128xf32>
    %119 = arith.divf %117, %118 : vector<2x128xf32>
    %120 = vector.extract_strided_slice %113 {offsets = [0, 128], sizes = [2, 128], strides = [1, 1]} : vector<2x512xf32> to vector<2x128xf32>
    %121 = arith.negf %120 : vector<2x128xf32>
    %122 = math.exp %121 : vector<2x128xf32>
    %cst_31 = arith.constant 1.000000e+00 : f32
    %123 = vector.broadcast %cst_31 : f32 to vector<2x128xf32>
    %124 = arith.addf %123, %122 : vector<2x128xf32>
    %125 = arith.divf %123, %124 : vector<2x128xf32>
    %126 = vector.extract_strided_slice %113 {offsets = [0, 256], sizes = [2, 128], strides = [1, 1]} : vector<2x512xf32> to vector<2x128xf32>
    %127 = math.tanh %126 : vector<2x128xf32>
    %128 = vector.extract_strided_slice %113 {offsets = [0, 384], sizes = [2, 128], strides = [1, 1]} : vector<2x512xf32> to vector<2x128xf32>
    %129 = arith.negf %128 : vector<2x128xf32>
    %130 = math.exp %129 : vector<2x128xf32>
    %cst_32 = arith.constant 1.000000e+00 : f32
    %131 = vector.broadcast %cst_32 : f32 to vector<2x128xf32>
    %132 = arith.addf %131, %130 : vector<2x128xf32>
    %133 = arith.divf %131, %132 : vector<2x128xf32>
    %134 = arith.mulf %125, %103 : vector<2x128xf32>
    %135 = arith.mulf %119, %127 : vector<2x128xf32>
    %136 = arith.addf %134, %135 : vector<2x128xf32>
    %137 = math.tanh %136 : vector<2x128xf32>
    %138 = arith.mulf %133, %137 : vector<2x128xf32>
    %c0_33 = arith.constant 0 : index
    %c3 = arith.constant 3 : index
    %c0_34 = arith.constant 0 : index
    %139 = vector.load %arg10[%c0_33, %c3, %c0_34] : memref<2x8x128xf32, #tpu.memory_space<vmem>>, vector<2x1x128xf32>
    %140 = vector.shape_cast %139 : vector<2x1x128xf32> to vector<2x128xf32>
    %141 = vector.shape_cast %138 : vector<2x128xf32> to vector<2x1x128xf32>
    tpu.vector_store %arg10[%c0_33, %c3, %c0_34], %141 {strides = array<i32>} : memref<2x8x128xf32, #tpu.memory_space<vmem>>, vector<2x1x128xf32>,
    %142 = vector.extract_strided_slice %7 {offsets = [0, 4, 0], sizes = [2, 1, 512], strides = [1, 1, 1]} : vector<2x8x512xf32> to vector<2x1x512xf32>
    %143 = vector.shape_cast %142 : vector<2x1x512xf32> to vector<2x512xf32>
    %144 = arith.truncf %138 : vector<2x128xf32> to vector<2x128xbf16>
    %cst_35 = arith.constant dense<0.000000e+00> : vector<2x512xf32>
    %145 = tpu.matmul %144, %2, %cst_35 {dimension_numbers = #tpu.dot_dimension_numbers<[1], [0], [0], [1], [0, 0, 1, 1], [], []>} : vector<2x128xbf16>, vector<128x512xbf16>, vector<2x512xf32> -> vector<2x512xf32>
    %146 = arith.addf %143, %145 : vector<2x512xf32>
    %147 = vector.extract_strided_slice %146 {offsets = [0, 0], sizes = [2, 128], strides = [1, 1]} : vector<2x512xf32> to vector<2x128xf32>
    %148 = arith.negf %147 : vector<2x128xf32>
    %149 = math.exp %148 : vector<2x128xf32>
    %cst_36 = arith.constant 1.000000e+00 : f32
    %150 = vector.broadcast %cst_36 : f32 to vector<2x128xf32>
    %151 = arith.addf %150, %149 : vector<2x128xf32>
    %152 = arith.divf %150, %151 : vector<2x128xf32>
    %153 = vector.extract_strided_slice %146 {offsets = [0, 128], sizes = [2, 128], strides = [1, 1]} : vector<2x512xf32> to vector<2x128xf32>
    %154 = arith.negf %153 : vector<2x128xf32>
    %155 = math.exp %154 : vector<2x128xf32>
    %cst_37 = arith.constant 1.000000e+00 : f32
    %156 = vector.broadcast %cst_37 : f32 to vector<2x128xf32>
    %157 = arith.addf %156, %155 : vector<2x128xf32>
    %158 = arith.divf %156, %157 : vector<2x128xf32>
    %159 = vector.extract_strided_slice %146 {offsets = [0, 256], sizes = [2, 128], strides = [1, 1]} : vector<2x512xf32> to vector<2x128xf32>
    %160 = math.tanh %159 : vector<2x128xf32>
    %161 = vector.extract_strided_slice %146 {offsets = [0, 384], sizes = [2, 128], strides = [1, 1]} : vector<2x512xf32> to vector<2x128xf32>
    %162 = arith.negf %161 : vector<2x128xf32>
    %163 = math.exp %162 : vector<2x128xf32>
    %cst_38 = arith.constant 1.000000e+00 : f32
    %164 = vector.broadcast %cst_38 : f32 to vector<2x128xf32>
    %165 = arith.addf %164, %163 : vector<2x128xf32>
    %166 = arith.divf %164, %165 : vector<2x128xf32>
    %167 = arith.mulf %158, %136 : vector<2x128xf32>
    %168 = arith.mulf %152, %160 : vector<2x128xf32>
    %169 = arith.addf %167, %168 : vector<2x128xf32>
    %170 = math.tanh %169 : vector<2x128xf32>
    %171 = arith.mulf %166, %170 : vector<2x128xf32>
    %c0_39 = arith.constant 0 : index
    %c4 = arith.constant 4 : index
    %c0_40 = arith.constant 0 : index
    %172 = vector.load %arg10[%c0_39, %c4, %c0_40] : memref<2x8x128xf32, #tpu.memory_space<vmem>>, vector<2x1x128xf32>
    %173 = vector.shape_cast %172 : vector<2x1x128xf32> to vector<2x128xf32>
    %174 = vector.shape_cast %171 : vector<2x128xf32> to vector<2x1x128xf32>
    tpu.vector_store %arg10[%c0_39, %c4, %c0_40], %174 {strides = array<i32>} : memref<2x8x128xf32, #tpu.memory_space<vmem>>, vector<2x1x128xf32>,
    %175 = vector.extract_strided_slice %7 {offsets = [0, 5, 0], sizes = [2, 1, 512], strides = [1, 1, 1]} : vector<2x8x512xf32> to vector<2x1x512xf32>
    %176 = vector.shape_cast %175 : vector<2x1x512xf32> to vector<2x512xf32>
    %177 = arith.truncf %171 : vector<2x128xf32> to vector<2x128xbf16>
    %cst_41 = arith.constant dense<0.000000e+00> : vector<2x512xf32>
    %178 = tpu.matmul %177, %2, %cst_41 {dimension_numbers = #tpu.dot_dimension_numbers<[1], [0], [0], [1], [0, 0, 1, 1], [], []>} : vector<2x128xbf16>, vector<128x512xbf16>, vector<2x512xf32> -> vector<2x512xf32>
    %179 = arith.addf %176, %178 : vector<2x512xf32>
    %180 = vector.extract_strided_slice %179 {offsets = [0, 0], sizes = [2, 128], strides = [1, 1]} : vector<2x512xf32> to vector<2x128xf32>
    %181 = arith.negf %180 : vector<2x128xf32>
    %182 = math.exp %181 : vector<2x128xf32>
    %cst_42 = arith.constant 1.000000e+00 : f32
    %183 = vector.broadcast %cst_42 : f32 to vector<2x128xf32>
    %184 = arith.addf %183, %182 : vector<2x128xf32>
    %185 = arith.divf %183, %184 : vector<2x128xf32>
    %186 = vector.extract_strided_slice %179 {offsets = [0, 128], sizes = [2, 128], strides = [1, 1]} : vector<2x512xf32> to vector<2x128xf32>
    %187 = arith.negf %186 : vector<2x128xf32>
    %188 = math.exp %187 : vector<2x128xf32>
    %cst_43 = arith.constant 1.000000e+00 : f32
    %189 = vector.broadcast %cst_43 : f32 to vector<2x128xf32>
    %190 = arith.addf %189, %188 : vector<2x128xf32>
    %191 = arith.divf %189, %190 : vector<2x128xf32>
    %192 = vector.extract_strided_slice %179 {offsets = [0, 256], sizes = [2, 128], strides = [1, 1]} : vector<2x512xf32> to vector<2x128xf32>
    %193 = math.tanh %192 : vector<2x128xf32>
    %194 = vector.extract_strided_slice %179 {offsets = [0, 384], sizes = [2, 128], strides = [1, 1]} : vector<2x512xf32> to vector<2x128xf32>
    %195 = arith.negf %194 : vector<2x128xf32>
    %196 = math.exp %195 : vector<2x128xf32>
    %cst_44 = arith.constant 1.000000e+00 : f32
    %197 = vector.broadcast %cst_44 : f32 to vector<2x128xf32>
    %198 = arith.addf %197, %196 : vector<2x128xf32>
    %199 = arith.divf %197, %198 : vector<2x128xf32>
    %200 = arith.mulf %191, %169 : vector<2x128xf32>
    %201 = arith.mulf %185, %193 : vector<2x128xf32>
    %202 = arith.addf %200, %201 : vector<2x128xf32>
    %203 = math.tanh %202 : vector<2x128xf32>
    %204 = arith.mulf %199, %203 : vector<2x128xf32>
    %c0_45 = arith.constant 0 : index
    %c5 = arith.constant 5 : index
    %c0_46 = arith.constant 0 : index
    %205 = vector.load %arg10[%c0_45, %c5, %c0_46] : memref<2x8x128xf32, #tpu.memory_space<vmem>>, vector<2x1x128xf32>
    %206 = vector.shape_cast %205 : vector<2x1x128xf32> to vector<2x128xf32>
    %207 = vector.shape_cast %204 : vector<2x128xf32> to vector<2x1x128xf32>
    tpu.vector_store %arg10[%c0_45, %c5, %c0_46], %207 {strides = array<i32>} : memref<2x8x128xf32, #tpu.memory_space<vmem>>, vector<2x1x128xf32>,
    %208 = vector.extract_strided_slice %7 {offsets = [0, 6, 0], sizes = [2, 1, 512], strides = [1, 1, 1]} : vector<2x8x512xf32> to vector<2x1x512xf32>
    %209 = vector.shape_cast %208 : vector<2x1x512xf32> to vector<2x512xf32>
    %210 = arith.truncf %204 : vector<2x128xf32> to vector<2x128xbf16>
    %cst_47 = arith.constant dense<0.000000e+00> : vector<2x512xf32>
    %211 = tpu.matmul %210, %2, %cst_47 {dimension_numbers = #tpu.dot_dimension_numbers<[1], [0], [0], [1], [0, 0, 1, 1], [], []>} : vector<2x128xbf16>, vector<128x512xbf16>, vector<2x512xf32> -> vector<2x512xf32>
    %212 = arith.addf %209, %211 : vector<2x512xf32>
    %213 = vector.extract_strided_slice %212 {offsets = [0, 0], sizes = [2, 128], strides = [1, 1]} : vector<2x512xf32> to vector<2x128xf32>
    %214 = arith.negf %213 : vector<2x128xf32>
    %215 = math.exp %214 : vector<2x128xf32>
    %cst_48 = arith.constant 1.000000e+00 : f32
    %216 = vector.broadcast %cst_48 : f32 to vector<2x128xf32>
    %217 = arith.addf %216, %215 : vector<2x128xf32>
    %218 = arith.divf %216, %217 : vector<2x128xf32>
    %219 = vector.extract_strided_slice %212 {offsets = [0, 128], sizes = [2, 128], strides = [1, 1]} : vector<2x512xf32> to vector<2x128xf32>
    %220 = arith.negf %219 : vector<2x128xf32>
    %221 = math.exp %220 : vector<2x128xf32>
    %cst_49 = arith.constant 1.000000e+00 : f32
    %222 = vector.broadcast %cst_49 : f32 to vector<2x128xf32>
    %223 = arith.addf %222, %221 : vector<2x128xf32>
    %224 = arith.divf %222, %223 : vector<2x128xf32>
    %225 = vector.extract_strided_slice %212 {offsets = [0, 256], sizes = [2, 128], strides = [1, 1]} : vector<2x512xf32> to vector<2x128xf32>
    %226 = math.tanh %225 : vector<2x128xf32>
    %227 = vector.extract_strided_slice %212 {offsets = [0, 384], sizes = [2, 128], strides = [1, 1]} : vector<2x512xf32> to vector<2x128xf32>
    %228 = arith.negf %227 : vector<2x128xf32>
    %229 = math.exp %228 : vector<2x128xf32>
    %cst_50 = arith.constant 1.000000e+00 : f32
    %230 = vector.broadcast %cst_50 : f32 to vector<2x128xf32>
    %231 = arith.addf %230, %229 : vector<2x128xf32>
    %232 = arith.divf %230, %231 : vector<2x128xf32>
    %233 = arith.mulf %224, %202 : vector<2x128xf32>
    %234 = arith.mulf %218, %226 : vector<2x128xf32>
    %235 = arith.addf %233, %234 : vector<2x128xf32>
    %236 = math.tanh %235 : vector<2x128xf32>
    %237 = arith.mulf %232, %236 : vector<2x128xf32>
    %c0_51 = arith.constant 0 : index
    %c6 = arith.constant 6 : index
    %c0_52 = arith.constant 0 : index
    %238 = vector.load %arg10[%c0_51, %c6, %c0_52] : memref<2x8x128xf32, #tpu.memory_space<vmem>>, vector<2x1x128xf32>
    %239 = vector.shape_cast %238 : vector<2x1x128xf32> to vector<2x128xf32>
    %240 = vector.shape_cast %237 : vector<2x128xf32> to vector<2x1x128xf32>
    tpu.vector_store %arg10[%c0_51, %c6, %c0_52], %240 {strides = array<i32>} : memref<2x8x128xf32, #tpu.memory_space<vmem>>, vector<2x1x128xf32>,
    %241 = vector.extract_strided_slice %7 {offsets = [0, 7, 0], sizes = [2, 1, 512], strides = [1, 1, 1]} : vector<2x8x512xf32> to vector<2x1x512xf32>
    %242 = vector.shape_cast %241 : vector<2x1x512xf32> to vector<2x512xf32>
    %243 = arith.truncf %237 : vector<2x128xf32> to vector<2x128xbf16>
    %cst_53 = arith.constant dense<0.000000e+00> : vector<2x512xf32>
    %244 = tpu.matmul %243, %2, %cst_53 {dimension_numbers = #tpu.dot_dimension_numbers<[1], [0], [0], [1], [0, 0, 1, 1], [], []>} : vector<2x128xbf16>, vector<128x512xbf16>, vector<2x512xf32> -> vector<2x512xf32>
    %245 = arith.addf %242, %244 : vector<2x512xf32>
    %246 = vector.extract_strided_slice %245 {offsets = [0, 0], sizes = [2, 128], strides = [1, 1]} : vector<2x512xf32> to vector<2x128xf32>
    %247 = arith.negf %246 : vector<2x128xf32>
    %248 = math.exp %247 : vector<2x128xf32>
    %cst_54 = arith.constant 1.000000e+00 : f32
    %249 = vector.broadcast %cst_54 : f32 to vector<2x128xf32>
    %250 = arith.addf %249, %248 : vector<2x128xf32>
    %251 = arith.divf %249, %250 : vector<2x128xf32>
    %252 = vector.extract_strided_slice %245 {offsets = [0, 128], sizes = [2, 128], strides = [1, 1]} : vector<2x512xf32> to vector<2x128xf32>
    %253 = arith.negf %252 : vector<2x128xf32>
    %254 = math.exp %253 : vector<2x128xf32>
    %cst_55 = arith.constant 1.000000e+00 : f32
    %255 = vector.broadcast %cst_55 : f32 to vector<2x128xf32>
    %256 = arith.addf %255, %254 : vector<2x128xf32>
    %257 = arith.divf %255, %256 : vector<2x128xf32>
    %258 = vector.extract_strided_slice %245 {offsets = [0, 256], sizes = [2, 128], strides = [1, 1]} : vector<2x512xf32> to vector<2x128xf32>
    %259 = math.tanh %258 : vector<2x128xf32>
    %260 = vector.extract_strided_slice %245 {offsets = [0, 384], sizes = [2, 128], strides = [1, 1]} : vector<2x512xf32> to vector<2x128xf32>
    %261 = arith.negf %260 : vector<2x128xf32>
    %262 = math.exp %261 : vector<2x128xf32>
    %cst_56 = arith.constant 1.000000e+00 : f32
    %263 = vector.broadcast %cst_56 : f32 to vector<2x128xf32>
    %264 = arith.addf %263, %262 : vector<2x128xf32>
    %265 = arith.divf %263, %264 : vector<2x128xf32>
    %266 = arith.mulf %257, %235 : vector<2x128xf32>
    %267 = arith.mulf %251, %259 : vector<2x128xf32>
    %268 = arith.addf %266, %267 : vector<2x128xf32>
    %269 = math.tanh %268 : vector<2x128xf32>
    %270 = arith.mulf %265, %269 : vector<2x128xf32>
    %c0_57 = arith.constant 0 : index
    %c7 = arith.constant 7 : index
    %c0_58 = arith.constant 0 : index
    %271 = vector.load %arg10[%c0_57, %c7, %c0_58] : memref<2x8x128xf32, #tpu.memory_space<vmem>>, vector<2x1x128xf32>
    %272 = vector.shape_cast %271 : vector<2x1x128xf32> to vector<2x128xf32>
    %273 = vector.shape_cast %270 : vector<2x128xf32> to vector<2x1x128xf32>
    tpu.vector_store %arg10[%c0_57, %c7, %c0_58], %273 {strides = array<i32>} : memref<2x8x128xf32, #tpu.memory_space<vmem>>, vector<2x1x128xf32>,
    %c0_59 = arith.constant 0 : index
    %c0_60 = arith.constant 0 : index
    %c0_61 = arith.constant 0 : index
    %274 = vector.load %arg10[%c0_59, %c0_60, %c0_61] : memref<2x8x128xf32, #tpu.memory_space<vmem>>, vector<2x8x128xf32>
    %275 = arith.truncf %274 : vector<2x8x128xf32> to vector<2x8x128xbf16>
    %c0_62 = arith.constant 0 : index
    %c0_63 = arith.constant 0 : index
    %276 = vector.load %arg5[%c0_62, %c0_63] : memref<128x384xbf16, #tpu.memory_space<vmem>>, vector<128x384xbf16>
    "tpu.trace_start"() <{level = 10 : i32, message = "bth,hk->btk"}> : () -> ()
    %cst_64 = arith.constant dense<0.000000e+00> : vector<2x8x384xf32>
    %277 = tpu.matmul %275, %276, %cst_64 {dimension_numbers = #tpu.dot_dimension_numbers<[2], [0], [0, 1], [1], [0, 0, 0, 1, 1, 1], [], []>} : vector<2x8x128xbf16>, vector<128x384xbf16>, vector<2x8x384xf32> -> vector<2x8x384xf32>
    "tpu.trace_stop"() : () -> ()
    %c0_65 = arith.constant 0 : index
    %c0_66 = arith.constant 0 : index
    %278 = vector.load %arg6[%c0_65, %c0_66] : memref<1x384xf32, #tpu.memory_space<vmem>>, vector<1x384xf32>
    %279 = vector.shape_cast %278 : vector<1x384xf32> to vector<1x1x384xf32>
    %280 = vector.broadcast %279 : vector<1x1x384xf32> to vector<2x8x384xf32>
    %281 = arith.addf %277, %280 : vector<2x8x384xf32>
    %282 = vector.extract_strided_slice %281 {offsets = [0, 0, 0], sizes = [2, 8, 128], strides = [1, 1, 1]} : vector<2x8x384xf32> to vector<2x8x128xf32>
    %283 = vector.extract_strided_slice %281 {offsets = [0, 0, 128], sizes = [2, 8, 128], strides = [1, 1, 1]} : vector<2x8x384xf32> to vector<2x8x128xf32>
    %284 = vector.extract_strided_slice %281 {offsets = [0, 0, 256], sizes = [2, 8, 128], strides = [1, 1, 1]} : vector<2x8x384xf32> to vector<2x8x128xf32>
    %285 = arith.truncf %282 : vector<2x8x128xf32> to vector<2x8x128xbf16>
    %286 = arith.truncf %283 : vector<2x8x128xf32> to vector<2x8x128xbf16>
    "tpu.trace_start"() <{level = 10 : i32, message = "bqh,bkh->bqk"}> : () -> ()
    %cst_67 = arith.constant dense<0.000000e+00> : vector<2x8x8xf32>
    %287 = tpu.matmul %285, %286, %cst_67 {dimension_numbers = #tpu.dot_dimension_numbers<[2], [2], [1], [1], [0, 0, 0, 1, 1, 1], [0], [0]>} : vector<2x8x128xbf16>, vector<2x8x128xbf16>, vector<2x8x8xf32> -> vector<2x8x8xf32>
    "tpu.trace_stop"() : () -> ()
    %cst_68 = arith.constant dense<0xFF800000> : vector<2x8xf32>
    %288 = vector.multi_reduction <maximumf>, %287, %cst_68 [2] : vector<2x8x8xf32> to vector<2x8xf32>
    %289 = vector.shape_cast %288 : vector<2x8xf32> to vector<2x8x1xf32>
    %290 = vector.broadcast %289 : vector<2x8x1xf32> to vector<2x8x8xf32>
    %291 = arith.subf %287, %290 : vector<2x8x8xf32>
    %292 = math.exp %291 : vector<2x8x8xf32>
    %cst_69 = arith.constant dense<0.000000e+00> : vector<2x8xf32>
    %293 = vector.multi_reduction <add>, %292, %cst_69 [2] : vector<2x8x8xf32> to vector<2x8xf32>
    %294 = vector.shape_cast %293 : vector<2x8xf32> to vector<2x8x1xf32>
    %295 = tpu.reciprocal %294 {approx = true} : vector<2x8x1xf32> -> vector<2x8x1xf32>
    %296 = vector.broadcast %295 : vector<2x8x1xf32> to vector<2x8x8xf32>
    %297 = arith.mulf %292, %296 : vector<2x8x8xf32>
    %cst_70 = arith.constant dense<0.000000e+00> : vector<2x8xf32>
    %298 = vector.multi_reduction <add>, %297, %cst_70 [1] : vector<2x8x8xf32> to vector<2x8xf32>
    %cst_71 = arith.constant 1.250000e-01 : f32
    %299 = vector.broadcast %cst_71 : f32 to vector<2x8xf32>
    %300 = arith.mulf %298, %299 : vector<2x8xf32>
    %301 = vector.shape_cast %300 : vector<2x8xf32> to vector<2x8x1xf32>
    %302 = vector.broadcast %301 : vector<2x8x1xf32> to vector<2x8x128xf32>
    %303 = arith.mulf %302, %284 : vector<2x8x128xf32>
    %cst_72 = arith.constant dense<0.000000e+00> : vector<2x128xf32>
    %304 = vector.multi_reduction <add>, %303, %cst_72 [1] : vector<2x8x128xf32> to vector<2x128xf32>
    %305 = arith.truncf %304 : vector<2x128xf32> to vector<2x128xbf16>
    %c0_73 = arith.constant 0 : index
    %c0_74 = arith.constant 0 : index
    %306 = vector.load %arg7[%c0_73, %c0_74] : memref<128x128xbf16, #tpu.memory_space<vmem>>, vector<128x128xbf16>
    %cst_75 = arith.constant dense<0.000000e+00> : vector<2x128xf32>
    %307 = tpu.matmul %305, %306, %cst_75 {dimension_numbers = #tpu.dot_dimension_numbers<[1], [0], [0], [1], [0, 0, 1, 1], [], []>} : vector<2x128xbf16>, vector<128x128xbf16>, vector<2x128xf32> -> vector<2x128xf32>
    %c0_76 = arith.constant 0 : index
    %c0_77 = arith.constant 0 : index
    %308 = vector.load %arg8[%c0_76, %c0_77] : memref<1x128xf32, #tpu.memory_space<vmem>>, vector<1x128xf32>
    %309 = vector.broadcast %308 : vector<1x128xf32> to vector<2x128xf32>
    %310 = arith.addf %307, %309 : vector<2x128xf32>
    %c0_78 = arith.constant 0 : index
    %c0_79 = arith.constant 0 : index
    %311 = vector.load %arg9[%c0_78, %c0_79] : memref<2x128xf32, #tpu.memory_space<vmem>>, vector<2x128xf32>
    tpu.vector_store %arg9[%c0_78, %c0_79], %310 {strides = array<i32>} : memref<2x128xf32, #tpu.memory_space<vmem>>, vector<2x128xf32>,
    return
  }
  func.func @transform_0(%arg0: i32) -> (i32, i32, i32) {
    %c0_i32 = arith.constant 0 : i32
    %c0_i32_0 = arith.constant 0 : i32
    %c0_i32_1 = arith.constant 0 : i32
    return %arg0, %c0_i32, %c0_i32_0 : i32, i32, i32
  }
  func.func @transform_1(%arg0: i32) -> (i32, i32) {
    %c0_i32 = arith.constant 0 : i32
    %c0_i32_0 = arith.constant 0 : i32
    %c0_i32_1 = arith.constant 0 : i32
    return %c0_i32, %c0_i32_0 : i32, i32
  }
  func.func @transform_2(%arg0: i32) -> (i32, i32) {
    %c0_i32 = arith.constant 0 : i32
    %c0_i32_0 = arith.constant 0 : i32
    %c0_i32_1 = arith.constant 0 : i32
    return %c0_i32, %c0_i32_0 : i32, i32
  }
  func.func @transform_3(%arg0: i32) -> (i32, i32) {
    %c0_i32 = arith.constant 0 : i32
    %c0_i32_0 = arith.constant 0 : i32
    %c0_i32_1 = arith.constant 0 : i32
    return %c0_i32, %c0_i32_0 : i32, i32
  }
  func.func @transform_4(%arg0: i32) -> (i32, i32) {
    %c0_i32 = arith.constant 0 : i32
    %c0_i32_0 = arith.constant 0 : i32
    %c0_i32_1 = arith.constant 0 : i32
    return %c0_i32, %c0_i32_0 : i32, i32
  }
  func.func @transform_5(%arg0: i32) -> (i32, i32) {
    %c0_i32 = arith.constant 0 : i32
    %c0_i32_0 = arith.constant 0 : i32
    %c0_i32_1 = arith.constant 0 : i32
    return %c0_i32, %c0_i32_0 : i32, i32
  }
  func.func @transform_6(%arg0: i32) -> (i32, i32) {
    %c0_i32 = arith.constant 0 : i32
    %c0_i32_0 = arith.constant 0 : i32
    %c0_i32_1 = arith.constant 0 : i32
    return %c0_i32, %c0_i32_0 : i32, i32
  }
  func.func @transform_7(%arg0: i32) -> (i32, i32) {
    %c0_i32 = arith.constant 0 : i32
    %c0_i32_0 = arith.constant 0 : i32
    %c0_i32_1 = arith.constant 0 : i32
    return %c0_i32, %c0_i32_0 : i32, i32
  }
  func.func @transform_8(%arg0: i32) -> (i32, i32) {
    %c0_i32 = arith.constant 0 : i32
    %c0_i32_0 = arith.constant 0 : i32
    return %arg0, %c0_i32 : i32, i32
  }
}

</mosaic_0001>

<bundles_post_ra>
// kernel: tpu_custom_call.1
= control target key start
LH: loop header
LB: loop body
LE: loop exit
PB: predicated region body
PF: predicated region fallthrough
CT: control target
= control target key end

     0   :  { %13 = vsyncpa [#allocation4], 0  ;;  %s3783_s0 = inlined_call_operand.vmem [shape: bf16[2,8,4], index: 0, kind: input, shape index: {}]   ;;  %s3784_s1 = inlined_call_operand.vmem [shape: bf16[4,512], index: 1, kind: input, shape index: {}]   ;;  %s3785_s2 = inlined_call_operand.hbm [shape: bf16[128,512], index: 2, kind: input, shape index: {}]   ;;  %s3786_s3 = inlined_call_operand.vmem [shape: f32[1,512], index: 3, kind: input, shape index: {}]   ;;  %s3787_s4 = inlined_call_operand.hbm [shape: bf16[128,384], index: 4, kind: input, shape index: {}]   ;;  %s3788_s5 = inlined_call_operand.vmem [shape: f32[1,384], index: 5, kind: input, shape index: {}]   ;;  %s3789_s6 = inlined_call_operand.hbm [shape: bf16[128,128], index: 6, kind: input, shape index: {}]   ;;  %s3790_s7 = inlined_call_operand.vmem [shape: f32[1,128], index: 7, kind: input, shape index: {}]   ;;  %s3791_s8 = inlined_call_operand.hbm [shape: f32[2,128], index: 8, kind: output, shape index: {}]  }
   0x1   :  { %14 = vsyncpa [#allocation7], 0 }
   0x2   :  { %15 = vsyncpa [#allocation5], 0  ;;  %s3044_s27 = smov [#allocation6]   ;;  %s2950_s9 = scalar_lea.hbm %s3787_s4, 3072 }
   0x3   :  { %s39_s28 = sshll.u32 %s3044_s27, 4  ;;  %p2951_p0 = scmp.ne.s32.totalorder %s3787_s4, %s2950_s9  ;;  %s40_s28 = int_to_ptr.vmem [resolvable:$true] %s39_s28 }
   0x4   :  { %p2954_p1 = scmp.lt.u32.totalorder %s2950_s9, %s3787_s4 }
   0x6   :  { %p2956_p2 = pnand %p2954_p1, %p2951_p0 }
   0x8   :  { %2959 = shalt.err (!%p2956_p2)
}
   0x9   :  { %s2960_s14 = scalar_lea.vmem %s40_s28, 3072  ;;  %p2965_p4 = scmp.lt.s32.totalorder %s40_s28, %s40_s28 }
   0xa   :  { %p2961_p3 = scmp.ne.s32.totalorder %s40_s28, %s2960_s14  ;;  %p2966_p5 = scmp.lt.s32.totalorder %s2960_s14, %s2960_s14 }
   0xc   :  { %p2967_p6 = por %p2966_p5, %p2965_p4 }
   0xe   :  { %p2968_p7 = pnand %p2967_p6, %p2961_p3 }
  0x10   :  { %2971 = shalt.err (!%p2968_p7)
}
  0x11   :  { %s3045_s15 = smov 192   ;;  %s3046_s16 = smov 12  }
  0x12   :  { %45 = dma.hbm_to_vmem [thread:$0]  %s3787_s4, 3072, %s40_s28, [#allocation7], %s3045_s15, %s3045_s15, %s3046_s16  }
  0x13   :  { %s3047_s19 = smov [#allocation3]   ;;  %s2972_s23 = scalar_lea.hbm %s3785_s2, 4096 }
  0x14   :  { %s25_s20 = sshll.u32 %s3047_s19, 4  ;;  %p2973_p8 = scmp.ne.s32.totalorder %s3785_s2, %s2972_s23  ;;  %s26_s20 = int_to_ptr.vmem [resolvable:$true] %s25_s20 }
  0x15   :  { %p2976_p9 = scmp.lt.u32.totalorder %s2972_s23, %s3785_s2 }
  0x17   :  { %p2978_p10 = pnand %p2976_p9, %p2973_p8 }
  0x19   :  { %2981 = shalt.err (!%p2978_p10)
}
  0x1a   :  { %s2982_s29 = scalar_lea.vmem %s26_s20, 4096  ;;  %p2987_p12 = scmp.lt.s32.totalorder %s26_s20, %s26_s20 }
  0x1b   :  { %p2983_p11 = scmp.ne.s32.totalorder %s26_s20, %s2982_s29  ;;  %p2988_p13 = scmp.lt.s32.totalorder %s2982_s29, %s2982_s29 }
  0x1d   :  { %p2989_p0 = por %p2988_p13, %p2987_p12 }
  0x1f   :  { %p2990_p1 = pnand %p2989_p0, %p2983_p11 }
  0x21   :  { %2993 = shalt.err (!%p2990_p1)
}
  0x22   :  { %s3048_s4 = smov 256   ;;  %s3049_s28 = smov 16  }
  0x23   :  { %31 = dma.hbm_to_vmem [thread:$0]  %s3785_s2, 4096, %s26_s20, [#allocation4], %s3048_s4, %s3048_s4, %s3049_s28  }
  0x24   :  { %s3050_s10 = smov [#allocation8]   ;;  %s2994_s14 = scalar_lea.hbm %s3789_s6, 1024 }
  0x25   :  { %s53_s11 = sshll.u32 %s3050_s10, 4  ;;  %p2995_p2 = scmp.ne.s32.totalorder %s3789_s6, %s2994_s14  ;;  %s54_s11 = int_to_ptr.vmem [resolvable:$true] %s53_s11 }
  0x26   :  { %p2998_p3 = scmp.lt.u32.totalorder %s2994_s14, %s3789_s6 }
  0x28   :  { %p3000_p4 = pnand %p2998_p3, %p2995_p2 }
  0x2a   :  { %3003 = shalt.err (!%p3000_p4)
}
  0x2b   :  { %s3004_s19 = scalar_lea.vmem %s54_s11, 1024  ;;  %p3009_p6 = scmp.lt.s32.totalorder %s54_s11, %s54_s11 }
  0x2c   :  { %p3005_p5 = scmp.ne.s32.totalorder %s54_s11, %s3004_s19  ;;  %p3010_p7 = scmp.lt.s32.totalorder %s3004_s19, %s3004_s19 }
  0x2e   :  { %p3011_p8 = por %p3010_p7, %p3009_p6 }
  0x30   :  { %p3012_p9 = pnand %p3011_p8, %p3005_p5 }
  0x32   :  { %3015 = shalt.err (!%p3012_p9)
}
  0x33   :  { %s3051_s2 = smov 64   ;;  %s3052_s20 = smov 4  }
  0x34   :  { %59 = dma.hbm_to_vmem [thread:$0]  %s3789_s6, 1024, %s54_s11, [#allocation7], %s3051_s2, %s3051_s2, %s3052_s20  }
  0x35   :  { %3038 = dma.done.wait [#allocation4], 4096  }
  0x36   :  { %3039 = vsyncadd [#allocation4], 4294963200 }
  0x37   :  { %3040 = dma.done.wait [#allocation7], 4096  }
  0x38   :  { %3041 = vsyncadd [#allocation7], 4294963200  ;;  %v109_v0 = vlaneseq  ;;  %v3053_v1 = vmov 1983009808   ;;  %v3795_v3 = vmov 0   ;;  %v74_v9 = vld [vmem:[%s3784_s1] sm:$0xff] }
  0x39   :  { %v137_v2 = vunpack.c.l.s4 %v3053_v1  ;;  %201 = vmatprep.mubr.bf16.mxu1 %v3795_v3  ;;  %447 = vmatprep.mubr.bf16.mxu0 %v3795_v3  ;;  %v3144_v7 = vld [vmem:[#allocation3 + $0x4] ss:$16 sps:$4 sm:$0xff]   ;;  %v3146_v8 = vld [vmem:[#allocation3] ss:$16 sps:$4 sm:$0xff]   ;;  %vm156_vm0 = vcmask 1041408   ;;  %v135_v10 = vcombine.high %v74_v9, %v74_v9  ;;  %v2571_v18 = vld [vmem:[%s3783_s0] sm:$0xff]  }
  0x3a   :  { %v3141_v4 = vshrl.u32 %v109_v0, 7  ;;  %415 = vmatprep.subr.bf16.mxu0 %v3144_v7  ;;  %v3152_v12 = vld [vmem:[#allocation3 + $0x24] ss:$16 sps:$4 sm:$0xff]   ;;  %v3155_v13 = vld [vmem:[#allocation3 + $0x20] ss:$16 sps:$4 sm:$0xff]   ;;  %vm152_vm1 = vcmask 31744  }
  0x3b   :  { %v138_v5 = vunpack.c.0.s8 %v137_v2  ;;  %416 = vmatpush1.bf16.msra.mxu0 %v3146_v8  ;;  %v3159_v17 = vld [vmem:[#allocation3 + $0x44] ss:$16 sps:$4 sm:$0xff]   ;;  %v3166_v20 = vld [vmem:[#allocation3 + $0x40] ss:$16 sps:$4 sm:$0xff]   ;;  %v3173_v23 = vld [vmem:[#allocation3 + $0xc] ss:$16 sps:$4 sm:$0xff]  }
  0x3c   :  { %417 = vmatprep.subr.bf16.mxu0 %v3152_v12  ;;  %v3171_v22 = vld [vmem:[#allocation3 + $0x64] ss:$16 sps:$4 sm:$0xff]   ;;  %v3177_v24 = vld [vmem:[#allocation3 + $0x60] ss:$16 sps:$4 sm:$0xff]   ;;  %v3184_v26 = vld [vmem:[#allocation3 + $0x8] ss:$16 sps:$4 sm:$0xff]  }
  0x3d   :  { %v141_v6 = vsub.s32 %v138_v5, %v3141_v4  ;;  %v3181_v25 = vld [vmem:[#allocation3 + $0x84] ss:$16 sps:$4 sm:$0xff]   ;;  %v3187_v27 = vld [vmem:[#allocation3 + $0x80] ss:$16 sps:$4 sm:$0xff]   ;;  %v3189_v28 = vld [vmem:[#allocation3 + $0x2c] ss:$16 sps:$4 sm:$0xff]  }
  0x3e   :  { %v3192_v29 = vld [vmem:[#allocation3 + $0xa4] ss:$16 sps:$4 sm:$0xff]   ;;  %v3195_v30 = vld [vmem:[#allocation3 + $0x28] ss:$16 sps:$4 sm:$0xff]   ;;  %v3199_v31 = vld [vmem:[#allocation3 + $0xa0] ss:$16 sps:$4 sm:$0xff]  }
  0x3f   :  { %v142_v11 = vrot.slane %v74_v9, %v141_v6  ;;  %v149_v14 = vrot.slane %v135_v10, %v141_v6  ;;  %418 = vmatpush1.bf16.msra.mxu0 %v3155_v13  ;;  %v3201_v32 = vld [vmem:[#allocation3 + $0x4c] ss:$16 sps:$4 sm:$0xff]   ;;  %v3205_v33 = vld [vmem:[#allocation3 + $0xc4] ss:$16 sps:$4 sm:$0xff]   ;;  %v3207_v34 = vld [vmem:[#allocation3 + $0x48] ss:$16 sps:$4 sm:$0xff]  }
  0x40   :  { %419 = vmatprep.subr.bf16.mxu0 %v3159_v17  ;;  %v3210_v35 = vld [vmem:[#allocation3 + $0xc0] ss:$16 sps:$4 sm:$0xff]   ;;  %v3212_v36 = vld [vmem:[#allocation3 + $0x6c] ss:$16 sps:$4 sm:$0xff]   ;;  %v3214_v37 = vld [vmem:[#allocation3 + $0xe4] ss:$16 sps:$4 sm:$0xff]  }
  0x41   :  { %v150_v15 = vcombine.high %v142_v11, %v142_v11  ;;  %v158_v16 = vsel %vm156_vm0, %v142_v11, 0  ;;  %v151_v19 = vcombine.high %v149_v14, %v149_v14  ;;  %v164_v21 = vsel %vm156_vm0, %v149_v14, 0  ;;  %v3220_v38 = vld [vmem:[#allocation3 + $0x68] ss:$16 sps:$4 sm:$0xff]   ;;  %v3222_v39 = vld [vmem:[#allocation3 + $0xe0] ss:$16 sps:$4 sm:$0xff]  }
  0x42   :  { %v3224_v40 = vld [vmem:[#allocation3 + $0x8c] ss:$16 sps:$4 sm:$0xff]   ;;  %v3230_v41 = vld [vmem:[#allocation3 + $0x88] ss:$16 sps:$4 sm:$0xff]   ;;  %v3793_v56 = vsub.s32 0, %v3141_v4  ;;  %v3794_v58 = vsub.s32 1, %v3141_v4 }
  0x43   :  { %2357 = vmatprep.subr.msk.bf16.mxu1 %vm156_vm0, %v150_v15  ;;  %420 = vmatpush1.bf16.msra.mxu0 %v3166_v20  ;;  %v3232_v42 = vld [vmem:[#allocation3 + $0xac] ss:$16 sps:$4 sm:$0xff]   ;;  %v3238_v43 = vld [vmem:[#allocation3 + $0xa8] ss:$16 sps:$4 sm:$0xff]   ;;  %vm578_vm2 = vcmask 1041409   ;;  %vm3056_vm3 = vmmov 0  }
  0x44   :  { %170 = vmatpush1.bf16.msra.mxu1 %v158_v16  ;;  %421 = vmatprep.subr.bf16.mxu0 %v3171_v22  ;;  %v3241_v44 = vld [vmem:[#allocation3 + $0xcc] ss:$16 sps:$4 sm:$0xff]   ;;  %v3249_v45 = vld [vmem:[#allocation3 + $0xc8] ss:$16 sps:$4 sm:$0xff]   ;;  %vm2160_vm4 = vcmask 64512   ;;  %s3057_s29 = smov [#allocation9]  }
  0x45   :  { %2359 = vmatprep.subr.msk.bf16.mxu1 %vm156_vm0, %v151_v19  ;;  %v3253_v46 = vld [vmem:[#allocation3 + $0xec] ss:$16 sps:$4 sm:$0xff]   ;;  %v3257_v47 = vld [vmem:[#allocation3 + $0xe8] ss:$16 sps:$4 sm:$0xff]   ;;  %s2346_s4 = sshll.u32 %s3057_s29, 4  ;;  %s2347_s4 = int_to_ptr.vmem [resolvable:$true] %s2346_s4 }
  0x46   :  { %v107_v57 = vld [vmem:[%s3786_s3] sm:$0xf]  ;;  %s3016_s28 = scalar_lea.vmem %s2347_s4, 32  ;;  %p3021_p11 = scmp.lt.s32.totalorder %s2347_s4, %s2347_s4 }
  0x47   :  { %2358 = vmatmul.mubr.msk.bf16.vlgmr.msra.gmra.mrb[0].mxu1 %vm152_vm1, %v2571_v18  ;;  %422 = vmatpush1.bf16.msra.mxu0 %v3177_v24  ;;  %v112_v59 = vrot.slane %v107_v57, %v3793_v56  ;;  %v116_v60 = vrot.slane %v107_v57, %v3794_v58  ;;  %p3017_p10 = scmp.ne.s32.totalorder %s2347_s4, %s3016_s28  ;;  %p3022_p12 = scmp.lt.s32.totalorder %s3016_s28, %s3016_s28 }
  0x48   :  { %213 = vmatpush1.bf16.msra.mxu1 %v164_v21  ;;  %244 = vmatprep.mubr.bf16.mxu1 %v3795_v3 }
  0x49   :  { %456 = vmatprep.subr.bf16.mxu1 %v3173_v23  ;;  %423 = vmatprep.subr.bf16.mxu0 %v3181_v25  ;;  %p3023_p13 = por %p3022_p12, %p3021_p11 }
  0x4b   :  { %424 = vmatpush1.bf16.msra.mxu0 %v3187_v27  ;;  %p3024_p0 = pnand %p3023_p13, %p3017_p10 }
  0x4c   :  { %425 = vmatprep.subr.bf16.mxu0 %v3192_v29 }
  0x4f   :  { %2360 = vmatmul.mubr.msk.bf16.vlgmr.msra.gmra.mrb[4].mxu1 %vm152_vm1, %v2571_v18  ;;  %426 = vmatpush1.bf16.msra.mxu0 %v3199_v31 }
  0x50   :  { %457 = vmatpush1.bf16.msra.mxu1 %v3184_v26  ;;  %488 = vmatprep.mubr.bf16.mxu1 %v3795_v3 }
  0x51   :  { %458 = vmatprep.subr.bf16.mxu1 %v3189_v28  ;;  %427 = vmatprep.subr.bf16.mxu0 %v3205_v33 }
  0x53   :  { %428 = vmatpush1.bf16.msra.mxu0 %v3210_v35 }
  0x54   :  { %459 = vmatpush1.bf16.msra.mxu1 %v3195_v30  ;;  %429 = vmatprep.subr.bf16.mxu0 %v3214_v37 }
  0x55   :  { %460 = vmatprep.subr.bf16.mxu1 %v3201_v32 }
  0x57   :  { %430 = vmatpush1.bf16.msra.mxu0 %v3222_v39 }
  0x58   :  { %461 = vmatpush1.bf16.msra.mxu1 %v3207_v34  ;;  %582 = vmatprep.subr.bf16.mxu0 %v3144_v7 }
  0x59   :  { %462 = vmatprep.subr.bf16.mxu1 %v3212_v36 }
  0x5a   :  { %448 = vmatmul.mubr.bf16.vlgmr.msra.gmra.mrb[0].mxu0 %v3795_v3 }
  0x5b   :  { %583 = vmatpush1.bf16.msra.mxu0 %v3146_v8  ;;  %614 = vmatprep.mubr.bf16.mxu0 %v3795_v3 }
  0x5c   :  { %463 = vmatpush1.bf16.msra.mxu1 %v3220_v38  ;;  %584 = vmatprep.subr.bf16.mxu0 %v3152_v12 }
  0x5d   :  { %464 = vmatprep.subr.bf16.mxu1 %v3224_v40 }
  0x5f   :  { %585 = vmatpush1.bf16.msra.mxu0 %v3155_v13 }
  0x60   :  { %465 = vmatpush1.bf16.msra.mxu1 %v3230_v41  ;;  %586 = vmatprep.subr.bf16.mxu0 %v3159_v17 }
  0x61   :  { %466 = vmatprep.subr.bf16.mxu1 %v3232_v42 }
  0x63   :  { %587 = vmatpush1.bf16.msra.mxu0 %v3166_v20 }
  0x64   :  { %467 = vmatpush1.bf16.msra.mxu1 %v3238_v43  ;;  %588 = vmatprep.subr.bf16.mxu0 %v3171_v22 }
  0x65   :  { %468 = vmatprep.subr.bf16.mxu1 %v3241_v44 }
  0x67   :  { %589 = vmatpush1.bf16.msra.mxu0 %v3177_v24 }
  0x68   :  { %469 = vmatpush1.bf16.msra.mxu1 %v3249_v45  ;;  %590 = vmatprep.subr.bf16.mxu0 %v3181_v25 }
  0x69   :  { %470 = vmatprep.subr.bf16.mxu1 %v3253_v46 }
  0x6b   :  { %591 = vmatpush1.bf16.msra.mxu0 %v3187_v27 }
  0x6c   :  { %471 = vmatpush1.bf16.msra.mxu1 %v3257_v47  ;;  %592 = vmatprep.subr.bf16.mxu0 %v3192_v29 }
  0x6d   :  { %623 = vmatprep.subr.bf16.mxu1 %v3173_v23 }
  0x6f   :  { %489 = vmatmul.mubr.bf16.vlgmr.msra.gmra.mrb[8].mxu1 %v3795_v3  ;;  %593 = vmatpush1.bf16.msra.mxu0 %v3199_v31 }
  0x70   :  { %624 = vmatpush1.bf16.msra.mxu1 %v3184_v26  ;;  %655 = vmatprep.mubr.bf16.mxu1 %v3795_v3 }
  0x71   :  { %625 = vmatprep.subr.bf16.mxu1 %v3189_v28  ;;  %594 = vmatprep.subr.bf16.mxu0 %v3205_v33 }
  0x73   :  { %595 = vmatpush1.bf16.msra.mxu0 %v3210_v35 }
  0x74   :  { %626 = vmatpush1.bf16.msra.mxu1 %v3195_v30  ;;  %596 = vmatprep.subr.bf16.mxu0 %v3214_v37 }
  0x75   :  { %627 = vmatprep.subr.bf16.mxu1 %v3201_v32 }
  0x77   :  { %597 = vmatpush1.bf16.msra.mxu0 %v3222_v39 }
  0x78   :  { %628 = vmatpush1.bf16.msra.mxu1 %v3207_v34  ;;  %754 = vmatprep.subr.bf16.mxu0 %v3144_v7 }
  0x79   :  { %629 = vmatprep.subr.bf16.mxu1 %v3212_v36 }
  0x7c   :  { %630 = vmatpush1.bf16.msra.mxu1 %v3220_v38 }
  0x7d   :  { %631 = vmatprep.subr.bf16.mxu1 %v3224_v40 }
  0x80   :  { %632 = vmatpush1.bf16.msra.mxu1 %v3230_v41 }
  0x81   :  { %633 = vmatprep.subr.bf16.mxu1 %v3232_v42 }
  0x84   :  { %634 = vmatpush1.bf16.msra.mxu1 %v3238_v43 }
  0x85   :  { %635 = vmatprep.subr.bf16.mxu1 %v3241_v44 }
  0x88   :  { %636 = vmatpush1.bf16.msra.mxu1 %v3249_v45 }
  0x89   :  { %637 = vmatprep.subr.bf16.mxu1 %v3253_v46 }
  0x8c   :  { %638 = vmatpush1.bf16.msra.mxu1 %v3257_v47 }
  0x8d   :  { %795 = vmatprep.subr.bf16.mxu1 %v3173_v23 }
 0x11a   :  { %v203_v48 = vpop.f32.mrb[0].mxu1 }
 0x11b   :  { %v205_v49 = vpop.f32.mrb[1].mxu1  ;;  %v3301_v61 = vadd.f32 %v203_v48, %v112_v59 }
 0x11c   :  { %v207_v50 = vpop.f32.mrb[2].mxu1  ;;  %v3303_v62 = vadd.f32 %v205_v49, %v116_v60  ;;  %v3792_v49 = vsub.s32 2, %v3141_v4 }
 0x11d   :  { %v209_v51 = vpop.f32.mrb[3].mxu1  ;;  %v3305_v0 = vadd.f32 %v207_v50, %v112_v59  ;;  %v123_v50 = vsub.s32 3, %v3141_v4 }
 0x11e   :  { %v3308_v6 = vadd.f32 %v209_v51, %v116_v60  ;;  %v120_v51 = vrot.slane %v107_v57, %v3792_v49 }
 0x11f   :  { %v124_v59 = vrot.slane %v107_v57, %v123_v50 }
 0x122   :  { %v246_v52 = vpop.f32.mrb[4].mxu1 }
 0x123   :  { %v248_v53 = vpop.f32.mrb[5].mxu1 }
 0x124   :  { %v250_v54 = vpop.f32.mrb[6].mxu1 }
 0x125   :  { %v252_v55 = vpop.f32.mrb[7].mxu1 }
 0x12d   :  { %v449_v63 = vpop.f32.mrb[0].mxu0 }
 0x12e   :  { %v501_v1 = vrot.slane %v449_v63, 1  ;;  %v513_v2 = vadd.f32 %v449_v63, %v3301_v61  ;;  %v451_v5 = vpop.f32.mrb[1].mxu0  ;;  %v3317_v63 = vadd.f32 %v246_v52, %v120_v51 }
 0x12f   :  { %v502_v9 = vrot.slane %v451_v5, 1  ;;  %v514_v10 = vadd.f32 %v451_v5, %v3303_v62  ;;  %v453_v11 = vpop.f32.mrb[2].mxu0  ;;  %v3321_v5 = vadd.f32 %v250_v54, %v120_v51 }
 0x130   :  { %v517_v14 = vadd.f32 %v501_v1, %v3305_v0  ;;  %v2393_v15 = vmul.f32 -1.442695, %v513_v2  ;;  %v454_v16 = vpop.f32.mrb[3].mxu0  ;;  %v3319_v2 = vadd.f32 %v248_v53, %v124_v59 }
 0x131   :  { %v518_v18 = vadd.f32 %v502_v9, %v3308_v6  ;;  %v2395_v19 = vmul.f32 -1.442695, %v514_v10 }
 0x132   :  { %2654 = vpow2.f32 %v2393_v15  ;;  %v2394_v21 = vmul.f32 -1.442695, %v517_v14  ;;  %v3323_v14 = vadd.f32 %v252_v55, %v124_v59 }
 0x133   :  { %2656 = vpow2.f32 %v2395_v19  ;;  %v2396_v48 = vmul.f32 -1.442695, %v518_v18 }
 0x134   :  { %2658 = vpow2.f32 %v2394_v21 }
 0x135   :  { %2660 = vpow2.f32 %v2396_v48 }
 0x13c   :  { %v2655_v60 = vpop.eup %2654 }
 0x13d   :  { %v2657_v1 = vpop.eup %2656  ;;  %v527_v9 = vadd.f32 1.0, %v2655_v60 }
 0x13e   :  { %v2659_v11 = vpop.eup %2658  ;;  %v539_v15 = vadd.f32 1.0, %v2657_v1 }
 0x13f   :  { %v2661_v21 = vpop.eup %2660  ;;  %v528_v57 = vadd.f32 1.0, %v2659_v11  ;;  %2662 = vrcp.f32 %v527_v9 }
 0x140   :  { %v540_v50 = vadd.f32 1.0, %v2661_v21  ;;  %2664 = vrcp.f32 %v539_v15 }
 0x141   :  { %2666 = vrcp.f32 %v528_v57 }
 0x142   :  { %v490_v10 = vpop.f32.mrb[8].mxu1  ;;  %2668 = vrcp.f32 %v540_v50 }
 0x143   :  { %v503_v16 = vrot.slane %v490_v10, 1  ;;  %v515_v18 = vadd.f32 %v490_v10, %v3317_v63  ;;  %v492_v19 = vpop.f32.mrb[9].mxu1 }
 0x144   :  { %v504_v52 = vrot.slane %v492_v19, 1  ;;  %v516_v48 = vadd.f32 %v492_v19, %v3319_v2  ;;  %v494_v53 = vpop.f32.mrb[10].mxu1 }
 0x145   :  { %v519_v54 = vadd.f32 %v503_v16, %v3321_v5  ;;  %v495_v51 = vpop.f32.mrb[11].mxu1  ;;  %2670 = vtanh.f32 %v515_v18 }
 0x146   :  { %v520_v55 = vadd.f32 %v504_v52, %v3323_v14  ;;  %v2397_v59 = vmul.f32 -1.442695, %v516_v48 }
 0x147   :  { %2672 = vtanh.f32 %v519_v54 }
 0x148   :  { %v2398_v60 = vmul.f32 -1.442695, %v520_v55  ;;  %2674 = vpow2.f32 %v2397_v59 }
 0x149   :  { %v2663_v1 = vpop.eup %2662 }
 0x14a   :  { %2676 = vpow2.f32 %v2398_v60  ;;  %v2665_v9 = vpop.eup %2664 }
 0x14b   :  { %v2667_v10 = vpop.eup %2666  ;;  %v559_v19 = vmul.f32 0.0, %v2665_v9 }
 0x14c   :  { %v2669_v11 = vpop.eup %2668 }
 0x14d   :  { %v560_v15 = vmul.f32 0.0, %v2669_v11 }
 0x14f   :  { %v2671_v21 = vpop.eup %2670 }
 0x150   :  { %v561_v16 = vmul.f32 %v2671_v21, %v2663_v1 }
 0x151   :  { %v2673_v53 = vpop.eup %2672 }
 0x152   :  { %v2675_v51 = vpop.eup %2674  ;;  %v562_v57 = vmul.f32 %v2673_v53, %v2667_v10  ;;  %v3329_v52 = vadd.f32 %v561_v16, %v559_v19 }
 0x153   :  { %v553_v48 = vadd.f32 1.0, %v2675_v51 }
 0x154   :  { %v2677_v49 = vpop.eup %2676  ;;  %v3331_v18 = vadd.f32 %v562_v57, %v560_v15  ;;  %2678 = vtanh.f32 %v3329_v52 }
 0x155   :  { %v554_v50 = vadd.f32 1.0, %v2677_v49 }
 0x156   :  { %2680 = vtanh.f32 %v3331_v18 }
 0x157   :  { %2682 = vrcp.f32 %v553_v48 }
 0x158   :  { %2684 = vrcp.f32 %v554_v50 }
 0x15e   :  { %v2679_v54 = vpop.eup %2678 }
 0x160   :  { %v2681_v55 = vpop.eup %2680 }
 0x161   :  { %v2683_v59 = vpop.eup %2682 }
 0x162   :  { %v2685_v60 = vpop.eup %2684  ;;  %v567_v1 = vmul.f32 %v2683_v59, %v2679_v54 }
 0x163   :  { %v568_v9 = vmul.f32 %v2685_v60, %v2681_v55 }
 0x164   :  { %569 = vst [vmem:[#allocation2] sm:$0x1] %v567_v1  ;;  %v571_v10 = vpack.c.bf16 %v567_v1, %v567_v1 }
 0x165   :  { %570 = vst [vmem:[#allocation2 + $0x8] sm:$0x1] %v568_v9  ;;  %v572_v11 = vpack.c.bf16 %v568_v9, %v568_v9 }
 0x166   :  { %v575_v21 = vunpack.c.l.b16 %v571_v10 }
 0x167   :  { %v576_v19 = vunpack.c.l.b16 %v572_v11 }
 0x169   :  { %v577_v49 = vrot.slane %v576_v19, 7 }
 0x16b   :  { %v579_v15 = vsel %vm578_vm2, %v577_v49, %v575_v21 }
 0x16c   :  { %v580_v53 = vpack.c.b16 %v579_v15, %v579_v15 }
 0x16e   :  { %615 = vmatmul.mubr.bf16.vlgmr.msra.gmra.mrb[4].mxu0 %v580_v53  ;;  %656 = vmatmul.mubr.bf16.vlgmr.msra.gmra.mrb[12].mxu1 %v580_v53 }
 0x16f   :  { %755 = vmatpush1.bf16.msra.mxu0 %v3146_v8  ;;  %796 = vmatpush1.bf16.msra.mxu1 %v3184_v26 }
 0x170   :  { %756 = vmatprep.subr.bf16.mxu0 %v3152_v12  ;;  %797 = vmatprep.subr.bf16.mxu1 %v3189_v28 }
 0x171   :  { %786 = vmatprep.mubr.bf16.mxu0 %v3795_v3  ;;  %827 = vmatprep.mubr.bf16.mxu1 %v3795_v3 }
 0x173   :  { %757 = vmatpush1.bf16.msra.mxu0 %v3155_v13  ;;  %798 = vmatpush1.bf16.msra.mxu1 %v3195_v30 }
 0x174   :  { %758 = vmatprep.subr.bf16.mxu0 %v3159_v17  ;;  %799 = vmatprep.subr.bf16.mxu1 %v3201_v32 }
 0x177   :  { %759 = vmatpush1.bf16.msra.mxu0 %v3166_v20  ;;  %800 = vmatpush1.bf16.msra.mxu1 %v3207_v34 }
 0x178   :  { %760 = vmatprep.subr.bf16.mxu0 %v3171_v22  ;;  %801 = vmatprep.subr.bf16.mxu1 %v3212_v36 }
 0x17b   :  { %761 = vmatpush1.bf16.msra.mxu0 %v3177_v24  ;;  %802 = vmatpush1.bf16.msra.mxu1 %v3220_v38 }
 0x17c   :  { %762 = vmatprep.subr.bf16.mxu0 %v3181_v25  ;;  %803 = vmatprep.subr.bf16.mxu1 %v3224_v40 }
 0x17f   :  { %763 = vmatpush1.bf16.msra.mxu0 %v3187_v27  ;;  %804 = vmatpush1.bf16.msra.mxu1 %v3230_v41 }
 0x180   :  { %764 = vmatprep.subr.bf16.mxu0 %v3192_v29  ;;  %805 = vmatprep.subr.bf16.mxu1 %v3232_v42 }
 0x183   :  { %765 = vmatpush1.bf16.msra.mxu0 %v3199_v31  ;;  %806 = vmatpush1.bf16.msra.mxu1 %v3238_v43 }
 0x184   :  { %766 = vmatprep.subr.bf16.mxu0 %v3205_v33  ;;  %807 = vmatprep.subr.bf16.mxu1 %v3241_v44 }
 0x187   :  { %767 = vmatpush1.bf16.msra.mxu0 %v3210_v35  ;;  %808 = vmatpush1.bf16.msra.mxu1 %v3249_v45 }
 0x188   :  { %768 = vmatprep.subr.bf16.mxu0 %v3214_v37  ;;  %809 = vmatprep.subr.bf16.mxu1 %v3253_v46 }
 0x18b   :  { %769 = vmatpush1.bf16.msra.mxu0 %v3222_v39  ;;  %810 = vmatpush1.bf16.msra.mxu1 %v3257_v47 }
 0x18c   :  { %931 = vmatprep.subr.bf16.mxu0 %v3144_v7  ;;  %972 = vmatprep.subr.bf16.mxu1 %v3173_v23 }
 0x241   :  { %v616_v16 = vpop.f32.mrb[4].mxu0  ;;  %v657_v51 = vpop.f32.mrb[12].mxu1 }
 0x242   :  { %v668_v57 = vrot.slane %v616_v16, 7  ;;  %v684_v48 = vadd.f32 %v616_v16, %v3305_v0  ;;  %v618_v50 = vpop.f32.mrb[5].mxu0  ;;  %v659_v54 = vpop.f32.mrb[13].mxu1 }
 0x243   :  { %v669_v55 = vrot.slane %v618_v50, 7  ;;  %v685_v59 = vadd.f32 %v618_v50, %v3308_v6  ;;  %v620_v60 = vpop.f32.mrb[6].mxu0  ;;  %v661_v1 = vpop.f32.mrb[14].mxu1  ;;  %v671_v49 = vrot.slane %v659_v54, 7  ;;  %v687_v50 = vadd.f32 %v659_v54, %v3323_v14 }
 0x244   :  { %v680_v9 = vadd.f32 %v668_v57, %v3301_v61  ;;  %v2400_v10 = vmul.f32 -1.442695, %v684_v48  ;;  %v621_v11 = vpop.f32.mrb[7].mxu0  ;;  %v662_v19 = vpop.f32.mrb[15].mxu1  ;;  %v670_v60 = vrot.slane %v657_v51, 7  ;;  %v686_v57 = vadd.f32 %v657_v51, %v3321_v5 }
 0x245   :  { %v681_v21 = vadd.f32 %v669_v55, %v3303_v62  ;;  %v2402_v53 = vmul.f32 -1.442695, %v685_v59  ;;  %v683_v16 = vadd.f32 %v671_v49, %v3319_v2  ;;  %v2404_v1 = vmul.f32 -1.442695, %v687_v50 }
 0x246   :  { %v2399_v15 = vmul.f32 -1.442695, %v680_v9  ;;  %2686 = vpow2.f32 %v2400_v10  ;;  %v682_v55 = vadd.f32 %v670_v60, %v3317_v63 }
 0x247   :  { %v2401_v56 = vmul.f32 -1.442695, %v681_v21  ;;  %v2403_v48 = vmul.f32 -1.442695, %v683_v16 }
 0x248   :  { %2688 = vpow2.f32 %v2399_v15 }
 0x249   :  { %2690 = vpow2.f32 %v2401_v56 }
 0x24a   :  { %2692 = vpow2.f32 %v2402_v53 }
 0x24b   :  { %2694 = vtanh.f32 %v686_v57  ;;  %v728_v57 = vrot.slane %v3329_v52, 7 }
 0x24c   :  { %2696 = vpow2.f32 %v2403_v48 }
 0x24d   :  { %2698 = vpow2.f32 %v2404_v1 }
 0x250   :  { %v2687_v11 = vpop.eup %2686 }
 0x251   :  { %v695_v9 = vadd.f32 1.0, %v2687_v11 }
 0x252   :  { %v2689_v59 = vpop.eup %2688 }
 0x253   :  { %v2691_v10 = vpop.eup %2690  ;;  %v694_v56 = vadd.f32 1.0, %v2689_v59  ;;  %2700 = vrcp.f32 %v695_v9  ;;  %v729_v9 = vrot.slane %v3331_v18, 7 }
 0x254   :  { %v2693_v19 = vpop.eup %2692  ;;  %2702 = vtanh.f32 %v682_v55  ;;  %v706_v21 = vadd.f32 1.0, %v2691_v10 }
 0x255   :  { %2704 = vrcp.f32 %v694_v56  ;;  %v707_v54 = vadd.f32 1.0, %v2693_v19  ;;  %v2695_v51 = vpop.eup %2694 }
 0x256   :  { %2706 = vrcp.f32 %v706_v21  ;;  %v2697_v49 = vpop.eup %2696 }
 0x257   :  { %2708 = vrcp.f32 %v707_v54  ;;  %v2699_v15 = vpop.eup %2698  ;;  %v720_v48 = vadd.f32 1.0, %v2697_v49 }
 0x258   :  { %v721_v55 = vadd.f32 1.0, %v2699_v15 }
 0x259   :  { %2710 = vrcp.f32 %v720_v48 }
 0x25a   :  { %2712 = vrcp.f32 %v721_v55 }
 0x25d   :  { %v2701_v53 = vpop.eup %2700 }
 0x25e   :  { %v2703_v16 = vpop.eup %2702  ;;  %v735_v50 = vmul.f32 %v2701_v53, %v2695_v51 }
 0x25f   :  { %v2705_v60 = vpop.eup %2704 }
 0x260   :  { %v2707_v1 = vpop.eup %2706  ;;  %v734_v11 = vmul.f32 %v2705_v60, %v2703_v16 }
 0x261   :  { %v2709_v59 = vpop.eup %2708  ;;  %v732_v10 = vmul.f32 %v2707_v1, %v728_v57 }
 0x262   :  { %v733_v56 = vmul.f32 %v2709_v59, %v729_v9 }
 0x263   :  { %v3380_v19 = vadd.f32 %v734_v11, %v732_v10  ;;  %v2711_v52 = vpop.eup %2710 }
 0x264   :  { %v3382_v21 = vadd.f32 %v735_v50, %v733_v56  ;;  %v2713_v54 = vpop.eup %2712 }
 0x265   :  { %2714 = vtanh.f32 %v3380_v19 }
 0x266   :  { %2716 = vtanh.f32 %v3382_v21 }
 0x26f   :  { %v2715_v51 = vpop.eup %2714 }
 0x270   :  { %v2717_v49 = vpop.eup %2716  ;;  %v740_v53 = vmul.f32 %v2715_v51, %v2711_v52 }
 0x271   :  { %v741_v18 = vmul.f32 %v2717_v49, %v2713_v54 }
 0x272   :  { %742 = vst [vmem:[#allocation2] sm:$0x2] %v740_v53  ;;  %v744_v15 = vpack.c.bf16 %v740_v53, %v740_v53 }
 0x273   :  { %743 = vst [vmem:[#allocation2 + $0x8] sm:$0x2] %v741_v18  ;;  %v745_v16 = vpack.c.bf16 %v741_v18, %v741_v18 }
 0x274   :  { %v748_v60 = vunpack.c.l.b16 %v744_v15 }
 0x275   :  { %v749_v57 = vunpack.c.l.b16 %v745_v16 }
 0x276   :  { %v750_v48 = vrot.slane %v748_v60, 1 }
 0x278   :  { %v751_v50 = vsel %vm578_vm2, %v749_v57, %v750_v48 }
 0x279   :  { %v752_v1 = vpack.c.b16 %v751_v50, %v751_v50 }
 0x27b   :  { %787 = vmatmul.mubr.bf16.vlgmr.msra.gmra.mrb[8].mxu0 %v752_v1  ;;  %828 = vmatmul.mubr.bf16.vlgmr.msra.gmra.mrb[16].mxu1 %v752_v1 }
 0x27c   :  { %932 = vmatpush1.bf16.msra.mxu0 %v3146_v8  ;;  %973 = vmatpush1.bf16.msra.mxu1 %v3184_v26 }
 0x27d   :  { %933 = vmatprep.subr.bf16.mxu0 %v3152_v12  ;;  %974 = vmatprep.subr.bf16.mxu1 %v3189_v28 }
 0x27e   :  { %963 = vmatprep.mubr.bf16.mxu0 %v3795_v3  ;;  %1004 = vmatprep.mubr.bf16.mxu1 %v3795_v3 }
 0x280   :  { %934 = vmatpush1.bf16.msra.mxu0 %v3155_v13  ;;  %975 = vmatpush1.bf16.msra.mxu1 %v3195_v30 }
 0x281   :  { %935 = vmatprep.subr.bf16.mxu0 %v3159_v17  ;;  %976 = vmatprep.subr.bf16.mxu1 %v3201_v32 }
 0x284   :  { %936 = vmatpush1.bf16.msra.mxu0 %v3166_v20  ;;  %977 = vmatpush1.bf16.msra.mxu1 %v3207_v34 }
 0x285   :  { %937 = vmatprep.subr.bf16.mxu0 %v3171_v22  ;;  %978 = vmatprep.subr.bf16.mxu1 %v3212_v36 }
 0x288   :  { %938 = vmatpush1.bf16.msra.mxu0 %v3177_v24  ;;  %979 = vmatpush1.bf16.msra.mxu1 %v3220_v38 }
 0x289   :  { %939 = vmatprep.subr.bf16.mxu0 %v3181_v25  ;;  %980 = vmatprep.subr.bf16.mxu1 %v3224_v40 }
 0x28c   :  { %940 = vmatpush1.bf16.msra.mxu0 %v3187_v27  ;;  %981 = vmatpush1.bf16.msra.mxu1 %v3230_v41 }
 0x28d   :  { %941 = vmatprep.subr.bf16.mxu0 %v3192_v29  ;;  %982 = vmatprep.subr.bf16.mxu1 %v3232_v42 }
 0x290   :  { %942 = vmatpush1.bf16.msra.mxu0 %v3199_v31  ;;  %983 = vmatpush1.bf16.msra.mxu1 %v3238_v43 }
 0x291   :  { %943 = vmatprep.subr.bf16.mxu0 %v3205_v33  ;;  %984 = vmatprep.subr.bf16.mxu1 %v3241_v44 }
 0x294   :  { %944 = vmatpush1.bf16.msra.mxu0 %v3210_v35  ;;  %985 = vmatpush1.bf16.msra.mxu1 %v3249_v45 }
 0x295   :  { %945 = vmatprep.subr.bf16.mxu0 %v3214_v37  ;;  %986 = vmatprep.subr.bf16.mxu1 %v3253_v46 }
 0x298   :  { %946 = vmatpush1.bf16.msra.mxu0 %v3222_v39  ;;  %987 = vmatpush1.bf16.msra.mxu1 %v3257_v47 }
 0x299   :  { %1108 = vmatprep.subr.bf16.mxu0 %v3144_v7  ;;  %1149 = vmatprep.subr.bf16.mxu1 %v3173_v23 }
 0x34e   :  { %v788_v8 = vpop.f32.mrb[8].mxu0  ;;  %v829_v12 = vpop.f32.mrb[16].mxu1 }
 0x34f   :  { %v840_v13 = vrot.slane %v788_v8, 6  ;;  %v844_v17 = vrot.slane %v788_v8, 7  ;;  %v790_v20 = vpop.f32.mrb[9].mxu0  ;;  %v831_v22 = vpop.f32.mrb[17].mxu1  ;;  %v842_v18 = vrot.slane %v829_v12, 6  ;;  %v846_v15 = vrot.slane %v829_v12, 7 }
 0x350   :  { %v841_v24 = vrot.slane %v790_v20, 6  ;;  %v845_v25 = vrot.slane %v790_v20, 7  ;;  %v792_v27 = vpop.f32.mrb[10].mxu0  ;;  %v833_v11 = vpop.f32.mrb[18].mxu1  ;;  %v843_v49 = vrot.slane %v831_v22, 6  ;;  %v847_v53 = vrot.slane %v831_v22, 7 }
 0x351   :  { %v856_v9 = vadd.f32 %v840_v13, %v3301_v61  ;;  %v860_v55 = vadd.f32 %v844_v17, %v3305_v0  ;;  %v793_v59 = vpop.f32.mrb[11].mxu0  ;;  %v834_v10 = vpop.f32.mrb[19].mxu1  ;;  %v858_v57 = vadd.f32 %v842_v18, %v3317_v63  ;;  %v862_v48 = vadd.f32 %v846_v15, %v3321_v5 }
 0x352   :  { %v857_v7 = vadd.f32 %v841_v24, %v3303_v62  ;;  %v861_v23 = vadd.f32 %v845_v25, %v3308_v6  ;;  %v859_v16 = vadd.f32 %v843_v49, %v3319_v2  ;;  %v863_v60 = vadd.f32 %v847_v53, %v3323_v14 }
 0x353   :  { %v2405_v56 = vmul.f32 -1.442695, %v856_v9  ;;  %v2406_v52 = vmul.f32 -1.442695, %v860_v55 }
 0x354   :  { %v2407_v54 = vmul.f32 -1.442695, %v857_v7  ;;  %v2408_v51 = vmul.f32 -1.442695, %v861_v23  ;;  %v2409_v50 = vmul.f32 -1.442695, %v859_v16 }
 0x355   :  { %2718 = vpow2.f32 %v2405_v56  ;;  %v2410_v1 = vmul.f32 -1.442695, %v863_v60  ;;  %v904_v23 = vrot.slane %v3380_v19, 7 }
 0x356   :  { %2720 = vpow2.f32 %v2406_v52 }
 0x357   :  { %2722 = vpow2.f32 %v2407_v54 }
 0x358   :  { %2724 = vpow2.f32 %v2408_v51  ;;  %v905_v51 = vrot.slane %v3382_v21, 7 }
 0x359   :  { %2726 = vtanh.f32 %v858_v57 }
 0x35a   :  { %2728 = vtanh.f32 %v862_v48 }
 0x35b   :  { %2730 = vpow2.f32 %v2409_v50 }
 0x35c   :  { %2732 = vpow2.f32 %v2410_v1 }
 0x35f   :  { %v2719_v8 = vpop.eup %2718 }
 0x360   :  { %v2721_v13 = vpop.eup %2720  ;;  %v870_v17 = vadd.f32 1.0, %v2719_v8 }
 0x361   :  { %v2723_v20 = vpop.eup %2722  ;;  %v871_v12 = vadd.f32 1.0, %v2721_v13 }
 0x362   :  { %v2725_v22 = vpop.eup %2724  ;;  %2734 = vrcp.f32 %v870_v17  ;;  %v882_v24 = vadd.f32 1.0, %v2723_v20 }
 0x363   :  { %2736 = vrcp.f32 %v871_v12  ;;  %v883_v25 = vadd.f32 1.0, %v2725_v22  ;;  %v2727_v27 = vpop.eup %2726 }
 0x364   :  { %2738 = vrcp.f32 %v882_v24  ;;  %v2729_v11 = vpop.eup %2728 }
 0x365   :  { %2740 = vrcp.f32 %v883_v25  ;;  %v2731_v9 = vpop.eup %2730 }
 0x366   :  { %v2733_v55 = vpop.eup %2732  ;;  %v896_v56 = vadd.f32 1.0, %v2731_v9  ;;  %v3448_v9 = vld [vmem:[#allocation3 + $0x20] ss:$16 sps:$4 sm:$0xff]  }
 0x367   :  { %v897_v49 = vadd.f32 1.0, %v2733_v55  ;;  %v3452_v55 = vld [vmem:[#allocation3 + $0x44] ss:$16 sps:$4 sm:$0xff]  }
 0x368   :  { %2742 = vrcp.f32 %v896_v56 }
 0x369   :  { %2744 = vrcp.f32 %v897_v49 }
 0x36c   :  { %v2735_v59 = vpop.eup %2734 }
 0x36d   :  { %v2737_v10 = vpop.eup %2736  ;;  %v910_v7 = vmul.f32 %v2735_v59, %v2727_v27  ;;  %v3438_v27 = vld [vmem:[#allocation3] ss:$16 sps:$4 sm:$0xff]  }
 0x36e   :  { %v2739_v52 = vpop.eup %2738  ;;  %v911_v54 = vmul.f32 %v2737_v10, %v2729_v11  ;;  %v3442_v11 = vld [vmem:[#allocation3 + $0x24] ss:$16 sps:$4 sm:$0xff]   ;;  %v3464_v59 = vld [vmem:[#allocation3 + $0x60] ss:$16 sps:$4 sm:$0xff]  }
 0x36f   :  { %v2741_v53 = vpop.eup %2740  ;;  %v908_v18 = vmul.f32 %v2739_v52, %v904_v23 }
 0x370   :  { %v909_v15 = vmul.f32 %v2741_v53, %v905_v51 }
 0x371   :  { %v3431_v16 = vadd.f32 %v910_v7, %v908_v18 }
 0x372   :  { %v3433_v60 = vadd.f32 %v911_v54, %v909_v15  ;;  %v2743_v19 = vpop.eup %2742 }
 0x373   :  { %2746 = vtanh.f32 %v3431_v16  ;;  %v2745_v57 = vpop.eup %2744 }
 0x374   :  { %2748 = vtanh.f32 %v3433_v60 }
 0x37d   :  { %v2747_v48 = vpop.eup %2746 }
 0x37e   :  { %v2749_v50 = vpop.eup %2748  ;;  %v916_v1 = vmul.f32 %v2747_v48, %v2743_v19 }
 0x37f   :  { %v917_v21 = vmul.f32 %v2749_v50, %v2745_v57 }
 0x380   :  { %918 = vst [vmem:[#allocation2] sm:$0x4] %v916_v1  ;;  %v920_v8 = vpack.c.bf16 %v916_v1, %v916_v1 }
 0x381   :  { %919 = vst [vmem:[#allocation2 + $0x8] sm:$0x4] %v917_v21  ;;  %v921_v13 = vpack.c.bf16 %v917_v21, %v917_v21 }
 0x382   :  { %v924_v17 = vunpack.c.l.b16 %v920_v8 }
 0x383   :  { %v925_v20 = vunpack.c.l.b16 %v921_v13 }
 0x384   :  { %v926_v12 = vrot.slane %v924_v17, 2 }
 0x385   :  { %v927_v22 = vrot.slane %v925_v20, 1 }
 0x387   :  { %v928_v24 = vsel %vm578_vm2, %v927_v22, %v926_v12 }
 0x388   :  { %v929_v25 = vpack.c.b16 %v928_v24, %v928_v24 }
 0x38a   :  { %964 = vmatmul.mubr.bf16.vlgmr.msra.gmra.mrb[12].mxu0 %v929_v25  ;;  %1005 = vmatmul.mubr.bf16.vlgmr.msra.gmra.mrb[20].mxu1 %v929_v25 }
 0x38b   :  { %1109 = vmatpush1.bf16.msra.mxu0 %v3438_v27  ;;  %1150 = vmatpush1.bf16.msra.mxu1 %v3184_v26  ;;  %v3456_v26 = vld [vmem:[#allocation3 + $0x40] ss:$16 sps:$4 sm:$0xff]  }
 0x38c   :  { %1110 = vmatprep.subr.bf16.mxu0 %v3442_v11  ;;  %1151 = vmatprep.subr.bf16.mxu1 %v3189_v28  ;;  %v3460_v28 = vld [vmem:[#allocation3 + $0x64] ss:$16 sps:$4 sm:$0xff]  }
 0x38d   :  { %1140 = vmatprep.mubr.bf16.mxu0 %v3795_v3  ;;  %1181 = vmatprep.mubr.bf16.mxu1 %v3795_v3 }
 0x38f   :  { %1111 = vmatpush1.bf16.msra.mxu0 %v3448_v9  ;;  %1152 = vmatpush1.bf16.msra.mxu1 %v3195_v30  ;;  %v3468_v30 = vld [vmem:[#allocation3 + $0x84] ss:$16 sps:$4 sm:$0xff]  }
 0x390   :  { %1112 = vmatprep.subr.bf16.mxu0 %v3452_v55  ;;  %1153 = vmatprep.subr.bf16.mxu1 %v3201_v32  ;;  %v3472_v32 = vld [vmem:[#allocation3 + $0x80] ss:$16 sps:$4 sm:$0xff]  }
 0x393   :  { %1113 = vmatpush1.bf16.msra.mxu0 %v3456_v26  ;;  %1154 = vmatpush1.bf16.msra.mxu1 %v3207_v34 }
 0x394   :  { %1114 = vmatprep.subr.bf16.mxu0 %v3460_v28  ;;  %1155 = vmatprep.subr.bf16.mxu1 %v3212_v36 }
 0x397   :  { %1115 = vmatpush1.bf16.msra.mxu0 %v3464_v59  ;;  %1156 = vmatpush1.bf16.msra.mxu1 %v3220_v38 }
 0x398   :  { %1116 = vmatprep.subr.bf16.mxu0 %v3468_v30  ;;  %1157 = vmatprep.subr.bf16.mxu1 %v3224_v40 }
 0x39b   :  { %1117 = vmatpush1.bf16.msra.mxu0 %v3472_v32  ;;  %1158 = vmatpush1.bf16.msra.mxu1 %v3230_v41 }
 0x39c   :  { %1118 = vmatprep.subr.bf16.mxu0 %v3192_v29  ;;  %1159 = vmatprep.subr.bf16.mxu1 %v3232_v42  ;;  %v3488_v29 = vld [vmem:[#allocation3 + $0x4] ss:$16 sps:$4 sm:$0xff]  }
 0x39f   :  { %1119 = vmatpush1.bf16.msra.mxu0 %v3199_v31  ;;  %1160 = vmatpush1.bf16.msra.mxu1 %v3238_v43  ;;  %v3491_v31 = vld [vmem:[#allocation3 + $0xc] ss:$16 sps:$4 sm:$0xff]  }
 0x3a0   :  { %1120 = vmatprep.subr.bf16.mxu0 %v3205_v33  ;;  %1161 = vmatprep.subr.bf16.mxu1 %v3241_v44 }
 0x3a3   :  { %1121 = vmatpush1.bf16.msra.mxu0 %v3210_v35  ;;  %1162 = vmatpush1.bf16.msra.mxu1 %v3249_v45 }
 0x3a4   :  { %1122 = vmatprep.subr.bf16.mxu0 %v3214_v37  ;;  %1163 = vmatprep.subr.bf16.mxu1 %v3253_v46 }
 0x3a7   :  { %1123 = vmatpush1.bf16.msra.mxu0 %v3222_v39  ;;  %1164 = vmatpush1.bf16.msra.mxu1 %v3257_v47 }
 0x3a8   :  { %1285 = vmatprep.subr.bf16.mxu0 %v3488_v29  ;;  %1326 = vmatprep.subr.bf16.mxu1 %v3491_v31 }
 0x45d   :  { %v965_v33 = vpop.f32.mrb[12].mxu0  ;;  %v1006_v34 = vpop.f32.mrb[20].mxu1 }
 0x45e   :  { %v1017_v35 = vrot.slane %v965_v33, 5  ;;  %v1021_v36 = vrot.slane %v965_v33, 6  ;;  %v967_v38 = vpop.f32.mrb[13].mxu0  ;;  %v1008_v37 = vpop.f32.mrb[21].mxu1  ;;  %v1019_v49 = vrot.slane %v1006_v34, 5  ;;  %v1023_v53 = vrot.slane %v1006_v34, 6 }
 0x45f   :  { %v1018_v40 = vrot.slane %v967_v38, 5  ;;  %v1022_v41 = vrot.slane %v967_v38, 6  ;;  %v969_v42 = vpop.f32.mrb[14].mxu0  ;;  %v1010_v39 = vpop.f32.mrb[22].mxu1  ;;  %v1020_v54 = vrot.slane %v1008_v37, 5  ;;  %v1024_v51 = vrot.slane %v1008_v37, 6 }
 0x460   :  { %v1033_v43 = vadd.f32 %v1017_v35, %v3301_v61  ;;  %v1037_v44 = vadd.f32 %v1021_v36, %v3305_v0  ;;  %v970_v45 = vpop.f32.mrb[15].mxu0  ;;  %v1011_v46 = vpop.f32.mrb[23].mxu1  ;;  %v1035_v19 = vadd.f32 %v1019_v49, %v3317_v63  ;;  %v1039_v57 = vadd.f32 %v1023_v53, %v3321_v5 }
 0x461   :  { %v1034_v47 = vadd.f32 %v1018_v40, %v3303_v62  ;;  %v1038_v10 = vadd.f32 %v1022_v41, %v3308_v6  ;;  %v1036_v18 = vadd.f32 %v1020_v54, %v3319_v2  ;;  %v1040_v15 = vadd.f32 %v1024_v51, %v3323_v14 }
 0x462   :  { %v2411_v7 = vmul.f32 -1.442695, %v1033_v43  ;;  %v2412_v23 = vmul.f32 -1.442695, %v1037_v44  ;;  %v1081_v37 = vrot.slane %v3431_v16, 7  ;;  %v1082_v39 = vrot.slane %v3433_v60, 7 }
 0x463   :  { %v2413_v56 = vmul.f32 -1.442695, %v1034_v47  ;;  %v2414_v52 = vmul.f32 -1.442695, %v1038_v10  ;;  %v2415_v48 = vmul.f32 -1.442695, %v1036_v18 }
 0x464   :  { %2750 = vpow2.f32 %v2411_v7  ;;  %v2416_v50 = vmul.f32 -1.442695, %v1040_v15 }
 0x465   :  { %2752 = vpow2.f32 %v2412_v23 }
 0x466   :  { %2754 = vpow2.f32 %v2413_v56 }
 0x467   :  { %2756 = vpow2.f32 %v2414_v52 }
 0x468   :  { %2758 = vtanh.f32 %v1035_v19 }
 0x469   :  { %2760 = vtanh.f32 %v1039_v57 }
 0x46a   :  { %2762 = vpow2.f32 %v2415_v48  ;;  %v3512_v48 = vld [vmem:[#allocation3 + $0x8] ss:$16 sps:$4 sm:$0xff]  }
 0x46b   :  { %2764 = vpow2.f32 %v2416_v50  ;;  %v3516_v50 = vld [vmem:[#allocation3 + $0x2c] ss:$16 sps:$4 sm:$0xff]  }
 0x46e   :  { %v2751_v1 = vpop.eup %2750 }
 0x46f   :  { %v2753_v21 = vpop.eup %2752  ;;  %v1047_v8 = vadd.f32 1.0, %v2751_v1  ;;  %v3522_v1 = vld [vmem:[#allocation3 + $0x28] ss:$16 sps:$4 sm:$0xff]  }
 0x470   :  { %v2755_v13 = vpop.eup %2754  ;;  %v1048_v17 = vadd.f32 1.0, %v2753_v21  ;;  %v3526_v21 = vld [vmem:[#allocation3 + $0x4c] ss:$16 sps:$4 sm:$0xff]  }
 0x471   :  { %v2757_v20 = vpop.eup %2756  ;;  %2766 = vrcp.f32 %v1047_v8  ;;  %v1059_v12 = vadd.f32 1.0, %v2755_v13  ;;  %v3530_v8 = vld [vmem:[#allocation3 + $0x48] ss:$16 sps:$4 sm:$0xff]   ;;  %v3534_v13 = vld [vmem:[#allocation3 + $0x6c] ss:$16 sps:$4 sm:$0xff]  }
 0x472   :  { %2768 = vrcp.f32 %v1048_v17  ;;  %v1060_v22 = vadd.f32 1.0, %v2757_v20  ;;  %v2759_v24 = vpop.eup %2758  ;;  %v3538_v17 = vld [vmem:[#allocation3 + $0x68] ss:$16 sps:$4 sm:$0xff]   ;;  %v3542_v20 = vld [vmem:[#allocation3 + $0x8c] ss:$16 sps:$4 sm:$0xff]  }
 0x473   :  { %2770 = vrcp.f32 %v1059_v12  ;;  %v2761_v25 = vpop.eup %2760  ;;  %v3546_v12 = vld [vmem:[#allocation3 + $0x88] ss:$16 sps:$4 sm:$0xff]  }
 0x474   :  { %2772 = vrcp.f32 %v1060_v22  ;;  %v2763_v33 = vpop.eup %2762  ;;  %v3549_v22 = vld [vmem:[#allocation3 + $0xa4] ss:$16 sps:$4 sm:$0xff]  }
 0x475   :  { %v2765_v34 = vpop.eup %2764  ;;  %v1073_v40 = vadd.f32 1.0, %v2763_v33  ;;  %v3558_v33 = vld [vmem:[#allocation3 + $0xa8] ss:$16 sps:$4 sm:$0xff]  }
 0x476   :  { %v1074_v43 = vadd.f32 1.0, %v2765_v34  ;;  %v3561_v34 = vld [vmem:[#allocation3 + $0xc4] ss:$16 sps:$4 sm:$0xff]  }
 0x477   :  { %2774 = vrcp.f32 %v1073_v40  ;;  %v3576_v40 = vld [vmem:[#allocation3 + $0xec] ss:$16 sps:$4 sm:$0xff]  }
 0x478   :  { %2776 = vrcp.f32 %v1074_v43 }
 0x47b   :  { %v2767_v35 = vpop.eup %2766 }
 0x47c   :  { %v2769_v36 = vpop.eup %2768  ;;  %v1087_v38 = vmul.f32 %v2767_v35, %v2759_v24  ;;  %v3552_v24 = vld [vmem:[#allocation3 + $0xac] ss:$16 sps:$4 sm:$0xff]  }
 0x47d   :  { %v2771_v41 = vpop.eup %2770  ;;  %v1088_v42 = vmul.f32 %v2769_v36, %v2761_v25  ;;  %v3555_v25 = vld [vmem:[#allocation3 + $0xa0] ss:$16 sps:$4 sm:$0xff]   ;;  %v3564_v35 = vld [vmem:[#allocation3 + $0xcc] ss:$16 sps:$4 sm:$0xff]  }
 0x47e   :  { %v2773_v44 = vpop.eup %2772  ;;  %v1085_v45 = vmul.f32 %v2771_v41, %v1081_v37  ;;  %v3567_v36 = vld [vmem:[#allocation3 + $0xc0] ss:$16 sps:$4 sm:$0xff]   ;;  %v3573_v37 = vld [vmem:[#allocation3 + $0xe4] ss:$16 sps:$4 sm:$0xff]  }
 0x47f   :  { %v1086_v46 = vmul.f32 %v2773_v44, %v1082_v39  ;;  %v3579_v41 = vld [vmem:[#allocation3 + $0xe0] ss:$16 sps:$4 sm:$0xff]  }
 0x480   :  { %v3504_v47 = vadd.f32 %v1087_v38, %v1085_v45  ;;  %v3570_v38 = vld [vmem:[#allocation3 + $0xc8] ss:$16 sps:$4 sm:$0xff]  }
 0x481   :  { %v3506_v10 = vadd.f32 %v1088_v42, %v1086_v46  ;;  %v2775_v16 = vpop.eup %2774  ;;  %v3582_v42 = vld [vmem:[#allocation3 + $0xe8] ss:$16 sps:$4 sm:$0xff]  }
 0x482   :  { %2778 = vtanh.f32 %v3504_v47  ;;  %v2777_v7 = vpop.eup %2776 }
 0x483   :  { %2780 = vtanh.f32 %v3506_v10 }
 0x48c   :  { %v2779_v23 = vpop.eup %2778 }
 0x48d   :  { %v2781_v56 = vpop.eup %2780  ;;  %v1093_v52 = vmul.f32 %v2779_v23, %v2775_v16 }
 0x48e   :  { %v1094_v60 = vmul.f32 %v2781_v56, %v2777_v7 }
 0x48f   :  { %1095 = vst [vmem:[#allocation2] sm:$0x8] %v1093_v52  ;;  %v1097_v54 = vpack.c.bf16 %v1093_v52, %v1093_v52 }
 0x490   :  { %1096 = vst [vmem:[#allocation2 + $0x8] sm:$0x8] %v1094_v60  ;;  %v1098_v51 = vpack.c.bf16 %v1094_v60, %v1094_v60 }
 0x491   :  { %v1101_v49 = vunpack.c.l.b16 %v1097_v54 }
 0x492   :  { %v1102_v53 = vunpack.c.l.b16 %v1098_v51 }
 0x493   :  { %v1103_v18 = vrot.slane %v1101_v49, 3 }
 0x494   :  { %v1104_v15 = vrot.slane %v1102_v53, 2 }
 0x496   :  { %v1105_v19 = vsel %vm578_vm2, %v1104_v15, %v1103_v18 }
 0x497   :  { %v1106_v57 = vpack.c.b16 %v1105_v19, %v1105_v19 }
 0x499   :  { %1141 = vmatmul.mubr.bf16.vlgmr.msra.gmra.mrb[16].mxu0 %v1106_v57  ;;  %1182 = vmatmul.mubr.bf16.vlgmr.msra.gmra.mrb[24].mxu1 %v1106_v57 }
 0x49a   :  { %1286 = vmatpush1.bf16.msra.mxu0 %v3438_v27  ;;  %1327 = vmatpush1.bf16.msra.mxu1 %v3512_v48 }
 0x49b   :  { %1287 = vmatprep.subr.bf16.mxu0 %v3442_v11  ;;  %1328 = vmatprep.subr.bf16.mxu1 %v3516_v50 }
 0x49c   :  { %1317 = vmatprep.mubr.bf16.mxu0 %v3795_v3  ;;  %1358 = vmatprep.mubr.bf16.mxu1 %v3795_v3 }
 0x49e   :  { %1288 = vmatpush1.bf16.msra.mxu0 %v3448_v9  ;;  %1329 = vmatpush1.bf16.msra.mxu1 %v3522_v1 }
 0x49f   :  { %1289 = vmatprep.subr.bf16.mxu0 %v3452_v55  ;;  %1330 = vmatprep.subr.bf16.mxu1 %v3526_v21 }
 0x4a2   :  { %1290 = vmatpush1.bf16.msra.mxu0 %v3456_v26  ;;  %1331 = vmatpush1.bf16.msra.mxu1 %v3530_v8 }
 0x4a3   :  { %1291 = vmatprep.subr.bf16.mxu0 %v3460_v28  ;;  %1332 = vmatprep.subr.bf16.mxu1 %v3534_v13 }
 0x4a6   :  { %1292 = vmatpush1.bf16.msra.mxu0 %v3464_v59  ;;  %1333 = vmatpush1.bf16.msra.mxu1 %v3538_v17 }
 0x4a7   :  { %1293 = vmatprep.subr.bf16.mxu0 %v3468_v30  ;;  %1334 = vmatprep.subr.bf16.mxu1 %v3542_v20 }
 0x4aa   :  { %1294 = vmatpush1.bf16.msra.mxu0 %v3472_v32  ;;  %1335 = vmatpush1.bf16.msra.mxu1 %v3546_v12 }
 0x4ab   :  { %1295 = vmatprep.subr.bf16.mxu0 %v3549_v22  ;;  %1336 = vmatprep.subr.bf16.mxu1 %v3552_v24 }
 0x4ae   :  { %1296 = vmatpush1.bf16.msra.mxu0 %v3555_v25  ;;  %1337 = vmatpush1.bf16.msra.mxu1 %v3558_v33 }
 0x4af   :  { %1297 = vmatprep.subr.bf16.mxu0 %v3561_v34  ;;  %1338 = vmatprep.subr.bf16.mxu1 %v3564_v35 }
 0x4b2   :  { %1298 = vmatpush1.bf16.msra.mxu0 %v3567_v36  ;;  %1339 = vmatpush1.bf16.msra.mxu1 %v3570_v38 }
 0x4b3   :  { %1299 = vmatprep.subr.bf16.mxu0 %v3573_v37  ;;  %1340 = vmatprep.subr.bf16.mxu1 %v3576_v40 }
 0x4b6   :  { %1300 = vmatpush1.bf16.msra.mxu0 %v3579_v41  ;;  %1341 = vmatpush1.bf16.msra.mxu1 %v3582_v42 }
 0x4b7   :  { %1462 = vmatprep.subr.bf16.mxu0 %v3488_v29  ;;  %1503 = vmatprep.subr.bf16.mxu1 %v3491_v31 }
 0x56c   :  { %v1142_v39 = vpop.f32.mrb[16].mxu0  ;;  %v1183_v43 = vpop.f32.mrb[24].mxu1 }
 0x56d   :  { %v1194_v44 = vrot.slane %v1142_v39, 4  ;;  %v1198_v45 = vrot.slane %v1142_v39, 5  ;;  %v1144_v46 = vpop.f32.mrb[17].mxu0  ;;  %v1185_v16 = vpop.f32.mrb[25].mxu1 }
 0x56e   :  { %v1195_v7 = vrot.slane %v1144_v46, 4  ;;  %v1199_v23 = vrot.slane %v1144_v46, 5  ;;  %v1146_v56 = vpop.f32.mrb[18].mxu0  ;;  %v1187_v52 = vpop.f32.mrb[26].mxu1  ;;  %v1197_v58 = vrot.slane %v1185_v16, 4  ;;  %v1201_v3 = vrot.slane %v1185_v16, 5 }
 0x56f   :  { %v1210_v60 = vadd.f32 %v1194_v44, %v3301_v61  ;;  %v1214_v54 = vadd.f32 %v1198_v45, %v3305_v0  ;;  %v1147_v51 = vpop.f32.mrb[19].mxu0  ;;  %v1188_v49 = vpop.f32.mrb[27].mxu1  ;;  %v1196_v46 = vrot.slane %v1183_v43, 4  ;;  %v1200_v56 = vrot.slane %v1183_v43, 5 }
 0x570   :  { %v1211_v53 = vadd.f32 %v1195_v7, %v3303_v62  ;;  %v1215_v18 = vadd.f32 %v1199_v23, %v3308_v6  ;;  %v1213_v44 = vadd.f32 %v1197_v58, %v3319_v2  ;;  %v1217_v45 = vadd.f32 %v1201_v3, %v3323_v14 }
 0x571   :  { %v2417_v15 = vmul.f32 -1.442695, %v1210_v60  ;;  %v2418_v19 = vmul.f32 -1.442695, %v1214_v54  ;;  %v1212_v7 = vadd.f32 %v1196_v46, %v3317_v63  ;;  %v1216_v23 = vadd.f32 %v1200_v56, %v3321_v5 }
 0x572   :  { %v2419_v57 = vmul.f32 -1.442695, %v1211_v53  ;;  %v2420_v39 = vmul.f32 -1.442695, %v1215_v18  ;;  %v2421_v52 = vmul.f32 -1.442695, %v1213_v44 }
 0x573   :  { %2782 = vpow2.f32 %v2417_v15  ;;  %v2422_v60 = vmul.f32 -1.442695, %v1217_v45  ;;  %v1258_v44 = vrot.slane %v3504_v47, 7 }
 0x574   :  { %2784 = vpow2.f32 %v2418_v19 }
 0x575   :  { %2786 = vpow2.f32 %v2419_v57 }
 0x576   :  { %2788 = vpow2.f32 %v2420_v39 }
 0x577   :  { %2790 = vtanh.f32 %v1212_v7 }
 0x578   :  { %2792 = vtanh.f32 %v1216_v23 }
 0x579   :  { %2794 = vpow2.f32 %v2421_v52  ;;  %v1259_v52 = vrot.slane %v3506_v10, 7 }
 0x57a   :  { %2796 = vpow2.f32 %v2422_v60 }
 0x57d   :  { %v2783_v54 = vpop.eup %2782 }
 0x57e   :  { %v2785_v51 = vpop.eup %2784  ;;  %v1224_v16 = vadd.f32 1.0, %v2783_v54 }
 0x57f   :  { %v2787_v49 = vpop.eup %2786  ;;  %v1225_v43 = vadd.f32 1.0, %v2785_v51 }
 0x580   :  { %v2789_v53 = vpop.eup %2788  ;;  %2798 = vrcp.f32 %v1224_v16  ;;  %v1236_v58 = vadd.f32 1.0, %v2787_v49 }
 0x581   :  { %2800 = vrcp.f32 %v1225_v43  ;;  %v1237_v3 = vadd.f32 1.0, %v2789_v53  ;;  %v2791_v18 = vpop.eup %2790 }
 0x582   :  { %2802 = vrcp.f32 %v1236_v58  ;;  %v2793_v15 = vpop.eup %2792 }
 0x583   :  { %2804 = vrcp.f32 %v1237_v3  ;;  %v2795_v19 = vpop.eup %2794 }
 0x584   :  { %v2797_v57 = vpop.eup %2796  ;;  %v1250_v45 = vadd.f32 1.0, %v2795_v19 }
 0x585   :  { %v1251_v60 = vadd.f32 1.0, %v2797_v57 }
 0x586   :  { %2806 = vrcp.f32 %v1250_v45 }
 0x587   :  { %2808 = vrcp.f32 %v1251_v60 }
 0x58a   :  { %v2799_v39 = vpop.eup %2798 }
 0x58b   :  { %v2801_v46 = vpop.eup %2800  ;;  %v1264_v56 = vmul.f32 %v2799_v39, %v2791_v18 }
 0x58c   :  { %v2803_v7 = vpop.eup %2802  ;;  %v1265_v23 = vmul.f32 %v2801_v46, %v2793_v15 }
 0x58d   :  { %v2805_v54 = vpop.eup %2804  ;;  %v1262_v51 = vmul.f32 %v2803_v7, %v1258_v44  ;;  %v3797_v7 = vmov 0  }
 0x58e   :  { %v1263_v16 = vmul.f32 %v2805_v54, %v1259_v52 }
 0x58f   :  { %v3597_v49 = vadd.f32 %v1264_v56, %v1262_v51 }
 0x590   :  { %v3599_v43 = vadd.f32 %v1265_v23, %v1263_v16  ;;  %v2807_v47 = vpop.eup %2806 }
 0x591   :  { %2810 = vtanh.f32 %v3597_v49  ;;  %v2809_v53 = vpop.eup %2808 }
 0x592   :  { %2812 = vtanh.f32 %v3599_v43 }
 0x59b   :  { %v2811_v58 = vpop.eup %2810 }
 0x59c   :  { %v2813_v3 = vpop.eup %2812  ;;  %v1270_v18 = vmul.f32 %v2811_v58, %v2807_v47 }
 0x59d   :  { %v1271_v10 = vmul.f32 %v2813_v3, %v2809_v53 }
 0x59e   :  { %1272 = vst [vmem:[#allocation2] sm:$0x10] %v1270_v18  ;;  %v1274_v15 = vpack.c.bf16 %v1270_v18, %v1270_v18 }
 0x59f   :  { %1273 = vst [vmem:[#allocation2 + $0x8] sm:$0x10] %v1271_v10  ;;  %v1275_v19 = vpack.c.bf16 %v1271_v10, %v1271_v10 }
 0x5a0   :  { %v1278_v57 = vunpack.c.l.b16 %v1274_v15 }
 0x5a1   :  { %v1279_v39 = vunpack.c.l.b16 %v1275_v19 }
 0x5a2   :  { %v1280_v46 = vrot.slane %v1278_v57, 4 }
 0x5a3   :  { %v1281_v56 = vrot.slane %v1279_v39, 3 }
 0x5a5   :  { %v1282_v44 = vsel %vm578_vm2, %v1281_v56, %v1280_v46 }
 0x5a6   :  { %v1283_v45 = vpack.c.b16 %v1282_v44, %v1282_v44 }
 0x5a8   :  { %1318 = vmatmul.mubr.bf16.vlgmr.msra.gmra.mrb[20].mxu0 %v1283_v45  ;;  %1359 = vmatmul.mubr.bf16.vlgmr.msra.gmra.mrb[28].mxu1 %v1283_v45 }
 0x5a9   :  { %1463 = vmatpush1.bf16.msra.mxu0 %v3438_v27  ;;  %1504 = vmatpush1.bf16.msra.mxu1 %v3512_v48 }
 0x5aa   :  { %1464 = vmatprep.subr.bf16.mxu0 %v3442_v11  ;;  %1505 = vmatprep.subr.bf16.mxu1 %v3516_v50 }
 0x5ab   :  { %1494 = vmatprep.mubr.bf16.mxu0 %v3797_v7  ;;  %1535 = vmatprep.mubr.bf16.mxu1 %v3797_v7 }
 0x5ad   :  { %1465 = vmatpush1.bf16.msra.mxu0 %v3448_v9  ;;  %1506 = vmatpush1.bf16.msra.mxu1 %v3522_v1 }
 0x5ae   :  { %1466 = vmatprep.subr.bf16.mxu0 %v3452_v55  ;;  %1507 = vmatprep.subr.bf16.mxu1 %v3526_v21 }
 0x5b1   :  { %1467 = vmatpush1.bf16.msra.mxu0 %v3456_v26  ;;  %1508 = vmatpush1.bf16.msra.mxu1 %v3530_v8 }
 0x5b2   :  { %1468 = vmatprep.subr.bf16.mxu0 %v3460_v28  ;;  %1509 = vmatprep.subr.bf16.mxu1 %v3534_v13 }
 0x5b5   :  { %1469 = vmatpush1.bf16.msra.mxu0 %v3464_v59  ;;  %1510 = vmatpush1.bf16.msra.mxu1 %v3538_v17 }
 0x5b6   :  { %1470 = vmatprep.subr.bf16.mxu0 %v3468_v30  ;;  %1511 = vmatprep.subr.bf16.mxu1 %v3542_v20 }
 0x5b9   :  { %1471 = vmatpush1.bf16.msra.mxu0 %v3472_v32  ;;  %1512 = vmatpush1.bf16.msra.mxu1 %v3546_v12 }
 0x5ba   :  { %1472 = vmatprep.subr.bf16.mxu0 %v3549_v22  ;;  %1513 = vmatprep.subr.bf16.mxu1 %v3552_v24 }
 0x5bd   :  { %1473 = vmatpush1.bf16.msra.mxu0 %v3555_v25  ;;  %1514 = vmatpush1.bf16.msra.mxu1 %v3558_v33 }
 0x5be   :  { %1474 = vmatprep.subr.bf16.mxu0 %v3561_v34  ;;  %1515 = vmatprep.subr.bf16.mxu1 %v3564_v35 }
 0x5c1   :  { %1475 = vmatpush1.bf16.msra.mxu0 %v3567_v36  ;;  %1516 = vmatpush1.bf16.msra.mxu1 %v3570_v38 }
 0x5c2   :  { %1476 = vmatprep.subr.bf16.mxu0 %v3573_v37  ;;  %1517 = vmatprep.subr.bf16.mxu1 %v3576_v40 }
 0x5c5   :  { %1477 = vmatpush1.bf16.msra.mxu0 %v3579_v41  ;;  %1518 = vmatpush1.bf16.msra.mxu1 %v3582_v42 }
 0x5c6   :  { %1639 = vmatprep.subr.bf16.mxu0 %v3488_v29  ;;  %1680 = vmatprep.subr.bf16.mxu1 %v3491_v31 }
 0x67b   :  { %v1319_v23 = vpop.f32.mrb[20].mxu0  ;;  %v1360_v52 = vpop.f32.mrb[28].mxu1 }
 0x67c   :  { %v1371_v60 = vrot.slane %v1319_v23, 3  ;;  %v1375_v54 = vrot.slane %v1319_v23, 4  ;;  %v1321_v51 = vpop.f32.mrb[21].mxu0  ;;  %v1362_v16 = vpop.f32.mrb[29].mxu1  ;;  %v1373_v23 = vrot.slane %v1360_v52, 3 }
 0x67d   :  { %v1372_v47 = vrot.slane %v1321_v51, 3  ;;  %v1376_v53 = vrot.slane %v1321_v51, 4  ;;  %v1323_v58 = vpop.f32.mrb[22].mxu0  ;;  %v1364_v3 = vpop.f32.mrb[30].mxu1  ;;  %v1374_v44 = vrot.slane %v1362_v16, 3  ;;  %v1378_v45 = vrot.slane %v1362_v16, 4 }
 0x67e   :  { %v1387_v18 = vadd.f32 %v1371_v60, %v3301_v61  ;;  %v1391_v10 = vadd.f32 %v1375_v54, %v3305_v0  ;;  %v1324_v15 = vpop.f32.mrb[23].mxu0  ;;  %v1365_v19 = vpop.f32.mrb[31].mxu1  ;;  %v1377_v51 = vrot.slane %v1360_v52, 4 }
 0x67f   :  { %v1388_v29 = vadd.f32 %v1372_v47, %v3303_v62  ;;  %v1392_v31 = vadd.f32 %v1376_v53, %v3308_v6  ;;  %v1390_v60 = vadd.f32 %v1374_v44, %v3319_v2  ;;  %v1394_v54 = vadd.f32 %v1378_v45, %v3323_v14 }
 0x680   :  { %v2423_v57 = vmul.f32 -1.442695, %v1387_v18  ;;  %v2424_v39 = vmul.f32 -1.442695, %v1391_v10  ;;  %v1389_v47 = vadd.f32 %v1373_v23, %v3317_v63  ;;  %v1393_v53 = vadd.f32 %v1377_v51, %v3321_v5 }
 0x681   :  { %v2425_v46 = vmul.f32 -1.442695, %v1388_v29  ;;  %v2426_v56 = vmul.f32 -1.442695, %v1392_v31  ;;  %v2427_v58 = vmul.f32 -1.442695, %v1390_v60 }
 0x682   :  { %2814 = vpow2.f32 %v2423_v57  ;;  %v2428_v3 = vmul.f32 -1.442695, %v1394_v54  ;;  %v1435_v51 = vrot.slane %v3597_v49, 7 }
 0x683   :  { %2816 = vpow2.f32 %v2424_v39 }
 0x684   :  { %2818 = vpow2.f32 %v2425_v46 }
 0x685   :  { %2820 = vpow2.f32 %v2426_v56 }
 0x686   :  { %2822 = vtanh.f32 %v1389_v47 }
 0x687   :  { %2824 = vtanh.f32 %v1393_v53  ;;  %v1436_v53 = vrot.slane %v3599_v43, 7 }
 0x688   :  { %2826 = vpow2.f32 %v2427_v58 }
 0x689   :  { %2828 = vpow2.f32 %v2428_v3 }
 0x68c   :  { %v2815_v18 = vpop.eup %2814 }
 0x68d   :  { %v2817_v10 = vpop.eup %2816  ;;  %v1401_v16 = vadd.f32 1.0, %v2815_v18 }
 0x68e   :  { %v2819_v15 = vpop.eup %2818  ;;  %v1402_v52 = vadd.f32 1.0, %v2817_v10 }
 0x68f   :  { %v2821_v19 = vpop.eup %2820  ;;  %2830 = vrcp.f32 %v1401_v16  ;;  %v1413_v29 = vadd.f32 1.0, %v2819_v15 }
 0x690   :  { %2832 = vrcp.f32 %v1402_v52  ;;  %v1414_v31 = vadd.f32 1.0, %v2821_v19  ;;  %v2823_v57 = vpop.eup %2822 }
 0x691   :  { %2834 = vrcp.f32 %v1413_v29  ;;  %v2825_v39 = vpop.eup %2824 }
 0x692   :  { %2836 = vrcp.f32 %v1414_v31  ;;  %v2827_v46 = vpop.eup %2826 }
 0x693   :  { %v2829_v56 = vpop.eup %2828  ;;  %v1427_v60 = vadd.f32 1.0, %v2827_v46 }
 0x694   :  { %v1428_v58 = vadd.f32 1.0, %v2829_v56 }
 0x695   :  { %2838 = vrcp.f32 %v1427_v60 }
 0x696   :  { %2840 = vrcp.f32 %v1428_v58 }
 0x699   :  { %v2831_v44 = vpop.eup %2830 }
 0x69a   :  { %v2833_v45 = vpop.eup %2832  ;;  %v1441_v23 = vmul.f32 %v2831_v44, %v2823_v57 }
 0x69b   :  { %v2835_v54 = vpop.eup %2834  ;;  %v1442_v47 = vmul.f32 %v2833_v45, %v2825_v39 }
 0x69c   :  { %v2837_v3 = vpop.eup %2836  ;;  %v1439_v18 = vmul.f32 %v2835_v54, %v1435_v51 }
 0x69d   :  { %v1440_v10 = vmul.f32 %v2837_v3, %v1436_v53 }
 0x69e   :  { %v3648_v16 = vadd.f32 %v1441_v23, %v1439_v18 }
 0x69f   :  { %v3650_v15 = vadd.f32 %v1442_v47, %v1440_v10  ;;  %v2839_v49 = vpop.eup %2838 }
 0x6a0   :  { %2842 = vtanh.f32 %v3648_v16  ;;  %v2841_v52 = vpop.eup %2840 }
 0x6a1   :  { %2844 = vtanh.f32 %v3650_v15 }
 0x6aa   :  { %v2843_v19 = vpop.eup %2842 }
 0x6ab   :  { %v2845_v29 = vpop.eup %2844  ;;  %v1447_v31 = vmul.f32 %v2843_v19, %v2839_v49 }
 0x6ac   :  { %v1448_v43 = vmul.f32 %v2845_v29, %v2841_v52 }
 0x6ad   :  { %1449 = vst [vmem:[#allocation2] sm:$0x20] %v1447_v31  ;;  %v1451_v57 = vpack.c.bf16 %v1447_v31, %v1447_v31 }
 0x6ae   :  { %1450 = vst [vmem:[#allocation2 + $0x8] sm:$0x20] %v1448_v43  ;;  %v1452_v39 = vpack.c.bf16 %v1448_v43, %v1448_v43 }
 0x6af   :  { %v1455_v46 = vunpack.c.l.b16 %v1451_v57 }
 0x6b0   :  { %v1456_v56 = vunpack.c.l.b16 %v1452_v39  ;;  %v1612_v39 = vrot.slane %v3648_v16, 7 }
 0x6b1   :  { %v1457_v44 = vrot.slane %v1455_v46, 5 }
 0x6b2   :  { %v1458_v45 = vrot.slane %v1456_v56, 4 }
 0x6b4   :  { %v1459_v23 = vsel %vm578_vm2, %v1458_v45, %v1457_v44  ;;  %v1613_v45 = vrot.slane %v3650_v15, 7 }
 0x6b5   :  { %v1460_v51 = vpack.c.b16 %v1459_v23, %v1459_v23 }
 0x6b7   :  { %1495 = vmatmul.mubr.bf16.vlgmr.msra.gmra.mrb[24].mxu0 %v1460_v51  ;;  %1536 = vmatmul.mubr.bf16.vlgmr.msra.gmra.mrb[32].mxu1 %v1460_v51 }
 0x6b8   :  { %1640 = vmatpush1.bf16.msra.mxu0 %v3438_v27  ;;  %1681 = vmatpush1.bf16.msra.mxu1 %v3512_v48 }
 0x6b9   :  { %1641 = vmatprep.subr.bf16.mxu0 %v3442_v11  ;;  %1682 = vmatprep.subr.bf16.mxu1 %v3516_v50 }
 0x6ba   :  { %1671 = vmatprep.mubr.bf16.mxu0 %v3797_v7  ;;  %1712 = vmatprep.mubr.bf16.mxu1 %v3797_v7 }
 0x6bc   :  { %1642 = vmatpush1.bf16.msra.mxu0 %v3448_v9  ;;  %1683 = vmatpush1.bf16.msra.mxu1 %v3522_v1 }
 0x6bd   :  { %1643 = vmatprep.subr.bf16.mxu0 %v3452_v55  ;;  %1684 = vmatprep.subr.bf16.mxu1 %v3526_v21 }
 0x6c0   :  { %1644 = vmatpush1.bf16.msra.mxu0 %v3456_v26  ;;  %1685 = vmatpush1.bf16.msra.mxu1 %v3530_v8 }
 0x6c1   :  { %1645 = vmatprep.subr.bf16.mxu0 %v3460_v28  ;;  %1686 = vmatprep.subr.bf16.mxu1 %v3534_v13 }
 0x6c4   :  { %1646 = vmatpush1.bf16.msra.mxu0 %v3464_v59  ;;  %1687 = vmatpush1.bf16.msra.mxu1 %v3538_v17 }
 0x6c5   :  { %1647 = vmatprep.subr.bf16.mxu0 %v3468_v30  ;;  %1688 = vmatprep.subr.bf16.mxu1 %v3542_v20 }
 0x6c8   :  { %1648 = vmatpush1.bf16.msra.mxu0 %v3472_v32  ;;  %1689 = vmatpush1.bf16.msra.mxu1 %v3546_v12 }
 0x6c9   :  { %1649 = vmatprep.subr.bf16.mxu0 %v3549_v22  ;;  %1690 = vmatprep.subr.bf16.mxu1 %v3552_v24 }
 0x6cc   :  { %1650 = vmatpush1.bf16.msra.mxu0 %v3555_v25  ;;  %1691 = vmatpush1.bf16.msra.mxu1 %v3558_v33 }
 0x6cd   :  { %1651 = vmatprep.subr.bf16.mxu0 %v3561_v34  ;;  %1692 = vmatprep.subr.bf16.mxu1 %v3564_v35 }
 0x6d0   :  { %1652 = vmatpush1.bf16.msra.mxu0 %v3567_v36  ;;  %1693 = vmatpush1.bf16.msra.mxu1 %v3570_v38 }
 0x6d1   :  { %1653 = vmatprep.subr.bf16.mxu0 %v3573_v37  ;;  %1694 = vmatprep.subr.bf16.mxu1 %v3576_v40 }
 0x6d4   :  { %1654 = vmatpush1.bf16.msra.mxu0 %v3579_v41  ;;  %1695 = vmatpush1.bf16.msra.mxu1 %v3582_v42 }
 0x78a   :  { %v1496_v27 = vpop.f32.mrb[24].mxu0  ;;  %v1537_v11 = vpop.f32.mrb[32].mxu1 }
 0x78b   :  { %v1548_v9 = vrot.slane %v1496_v27, 2  ;;  %v1552_v55 = vrot.slane %v1496_v27, 3  ;;  %v1498_v26 = vpop.f32.mrb[25].mxu0  ;;  %v1539_v28 = vpop.f32.mrb[33].mxu1  ;;  %v1550_v34 = vrot.slane %v1537_v11, 2  ;;  %v1554_v35 = vrot.slane %v1537_v11, 3 }
 0x78c   :  { %v1549_v59 = vrot.slane %v1498_v26, 2  ;;  %v1553_v30 = vrot.slane %v1498_v26, 3  ;;  %v1500_v32 = vpop.f32.mrb[26].mxu0  ;;  %v1541_v48 = vpop.f32.mrb[34].mxu1  ;;  %v1551_v25 = vrot.slane %v1539_v28, 2  ;;  %v1555_v33 = vrot.slane %v1539_v28, 3 }
 0x78d   :  { %v1564_v50 = vadd.f32 %v1548_v9, %v3301_v61  ;;  %v1568_v1 = vadd.f32 %v1552_v55, %v3305_v0  ;;  %v1501_v21 = vpop.f32.mrb[27].mxu0  ;;  %v1542_v8 = vpop.f32.mrb[35].mxu1  ;;  %v1566_v37 = vadd.f32 %v1550_v34, %v3317_v63  ;;  %v1570_v40 = vadd.f32 %v1554_v35, %v3321_v5  ;;  %v2621_v34 = vld [vmem:[#allocation6 + $0x20] ss:$12 sps:$4 sm:$0xff]  }
 0x78e   :  { %v1565_v13 = vadd.f32 %v1549_v59, %v3303_v62  ;;  %v1569_v17 = vadd.f32 %v1553_v30, %v3308_v6  ;;  %v1567_v36 = vadd.f32 %v1551_v25, %v3319_v2  ;;  %v1571_v38 = vadd.f32 %v1555_v33, %v3323_v14  ;;  %v2620_v25 = vld [vmem:[#allocation6 + $0x1c] ss:$12 sps:$4 sm:$0xff]   ;;  %v2618_v33 = vld [vmem:[#allocation6 + $0x18] ss:$12 sps:$4 sm:$0xff]   ;;  %v2624_v35 = vld [vmem:[#allocation6 + $0x34] ss:$12 sps:$4 sm:$0xff]  }
 0x78f   :  { %v2429_v20 = vmul.f32 -1.442695, %v1564_v50  ;;  %v2430_v12 = vmul.f32 -1.442695, %v1568_v1 }
 0x790   :  { %v2431_v22 = vmul.f32 -1.442695, %v1565_v13  ;;  %v2432_v24 = vmul.f32 -1.442695, %v1569_v17  ;;  %v2433_v41 = vmul.f32 -1.442695, %v1567_v36 }
 0x791   :  { %2846 = vpow2.f32 %v2429_v20  ;;  %v2434_v42 = vmul.f32 -1.442695, %v1571_v38  ;;  %v2616_v20 = vld [vmem:[#allocation6 + $0x4] ss:$12 sps:$4 sm:$0xff]   ;;  %v2628_v38 = vld [vmem:[#allocation6 + $0x4c] ss:$12 sps:$4 sm:$0xff]  }
 0x792   :  { %2848 = vpow2.f32 %v2430_v12  ;;  %v2614_v12 = vld [vmem:[#allocation6] ss:$12 sps:$4 sm:$0xff]   ;;  %1992 = vmatprep.subr.bf16.mxu0 %v2616_v20  ;;  %v2625_v36 = vld [vmem:[#allocation6 + $0x38] ss:$12 sps:$4 sm:$0xff]  }
 0x793   :  { %2850 = vpow2.f32 %v2431_v22  ;;  %v2617_v22 = vld [vmem:[#allocation6 + $0x8] ss:$12 sps:$4 sm:$0xff]  }
 0x794   :  { %2852 = vpow2.f32 %v2432_v24  ;;  %v3055_v24 = vmov 0.0  }
 0x795   :  { %2854 = vtanh.f32 %v1566_v37  ;;  %2498 = vmatprep.subr.bf16.mxu1 %v3055_v24  ;;  %v2626_v37 = vld [vmem:[#allocation6 + $0x48] ss:$12 sps:$4 sm:$0xff]  }
 0x796   :  { %2856 = vtanh.f32 %v1570_v40  ;;  %v2629_v40 = vld [vmem:[#allocation6 + $0x50] ss:$12 sps:$4 sm:$0xff]  }
 0x797   :  { %2858 = vpow2.f32 %v2433_v41  ;;  %v2632_v41 = vld [vmem:[#allocation6 + $0x64] ss:$12 sps:$4 sm:$0xff]  }
 0x798   :  { %2860 = vpow2.f32 %v2434_v42  ;;  %v2630_v42 = vld [vmem:[#allocation6 + $0x60] ss:$12 sps:$4 sm:$0xff]  }
 0x79b   :  { %v2847_v60 = vpop.eup %2846 }
 0x79c   :  { %v2849_v54 = vpop.eup %2848  ;;  %v1578_v47 = vadd.f32 1.0, %v2847_v60  ;;  %v2633_v60 = vld [vmem:[#allocation6 + $0x68] ss:$12 sps:$4 sm:$0xff]  }
 0x79d   :  { %v2851_v53 = vpop.eup %2850  ;;  %v1579_v58 = vadd.f32 1.0, %v2849_v54  ;;  %v2636_v54 = vld [vmem:[#allocation6 + $0x7c] ss:$12 sps:$4 sm:$0xff]  }
 0x79e   :  { %v2853_v3 = vpop.eup %2852  ;;  %2862 = vrcp.f32 %v1578_v47  ;;  %v1590_v18 = vadd.f32 1.0, %v2851_v53  ;;  %v2634_v47 = vld [vmem:[#allocation6 + $0x78] ss:$12 sps:$4 sm:$0xff]   ;;  %v2637_v53 = vld [vmem:[#allocation6 + $0x80] ss:$12 sps:$4 sm:$0xff]  }
 0x79f   :  { %2864 = vrcp.f32 %v1579_v58  ;;  %v1591_v10 = vadd.f32 1.0, %v2853_v3  ;;  %v2855_v49 = vpop.eup %2854  ;;  %v2640_v58 = vld [vmem:[#allocation6 + $0x94] ss:$12 sps:$4 sm:$0xff]   ;;  %v2638_v3 = vld [vmem:[#allocation6 + $0x90] ss:$12 sps:$4 sm:$0xff]  }
 0x7a0   :  { %2866 = vrcp.f32 %v1590_v18  ;;  %v2857_v52 = vpop.eup %2856  ;;  %v2641_v18 = vld [vmem:[#allocation6 + $0x98] ss:$12 sps:$4 sm:$0xff]  }
 0x7a1   :  { %2868 = vrcp.f32 %v1591_v10  ;;  %v2859_v19 = vpop.eup %2858  ;;  %v2644_v10 = vld [vmem:[#allocation6 + $0xac] ss:$12 sps:$4 sm:$0xff]  }
 0x7a2   :  { %v2861_v29 = vpop.eup %2860  ;;  %v1604_v46 = vadd.f32 1.0, %v2859_v19 }
 0x7a3   :  { %v1605_v23 = vadd.f32 1.0, %v2861_v29 }
 0x7a4   :  { %2870 = vrcp.f32 %v1604_v46 }
 0x7a5   :  { %2872 = vrcp.f32 %v1605_v23 }
 0x7a8   :  { %v2863_v31 = vpop.eup %2862 }
 0x7a9   :  { %v2865_v43 = vpop.eup %2864  ;;  %v1618_v57 = vmul.f32 %v2863_v31, %v2855_v49  ;;  %v2642_v49 = vld [vmem:[#allocation6 + $0xa8] ss:$12 sps:$4 sm:$0xff]  }
 0x7aa   :  { %v2867_v56 = vpop.eup %2866  ;;  %v1619_v44 = vmul.f32 %v2865_v43, %v2857_v52  ;;  %v2645_v52 = vld [vmem:[#allocation6 + $0xb0] ss:$12 sps:$4 sm:$0xff]  }
 0x7ab   :  { %v2869_v51 = vpop.eup %2868  ;;  %v1616_v27 = vmul.f32 %v2867_v56, %v1612_v39 }
 0x7ac   :  { %v1617_v11 = vmul.f32 %v2869_v51, %v1613_v45 }
 0x7ad   :  { %v3697_v9 = vadd.f32 %v1618_v57, %v1616_v27 }
 0x7ae   :  { %v3699_v55 = vadd.f32 %v1619_v44, %v1617_v11  ;;  %v2871_v16 = vpop.eup %2870 }
 0x7af   :  { %2874 = vtanh.f32 %v3697_v9  ;;  %v2873_v26 = vpop.eup %2872 }
 0x7b0   :  { %2876 = vtanh.f32 %v3699_v55 }
 0x7b9   :  { %v2875_v28 = vpop.eup %2874 }
 0x7ba   :  { %v2877_v59 = vpop.eup %2876  ;;  %v1624_v30 = vmul.f32 %v2875_v28, %v2871_v16 }
 0x7bb   :  { %v1625_v15 = vmul.f32 %v2877_v59, %v2873_v26 }
 0x7bc   :  { %1626 = vst [vmem:[#allocation2] sm:$0x40] %v1624_v30  ;;  %v1628_v32 = vpack.c.bf16 %v1624_v30, %v1624_v30 }
 0x7bd   :  { %1627 = vst [vmem:[#allocation2 + $0x8] sm:$0x40] %v1625_v15  ;;  %v1629_v48 = vpack.c.bf16 %v1625_v15, %v1625_v15 }
 0x7be   :  { %v1632_v50 = vunpack.c.l.b16 %v1628_v32 }
 0x7bf   :  { %v1633_v1 = vunpack.c.l.b16 %v1629_v48 }
 0x7c0   :  { %v1634_v21 = vrot.slane %v1632_v50, 6 }
 0x7c1   :  { %v1635_v8 = vrot.slane %v1633_v1, 5 }
 0x7c3   :  { %v1636_v13 = vsel %vm578_vm2, %v1635_v8, %v1634_v21 }
 0x7c4   :  { %v1637_v17 = vpack.c.b16 %v1636_v13, %v1636_v13 }
 0x7c6   :  { %1672 = vmatmul.mubr.bf16.vlgmr.msra.gmra.mrb[28].mxu0 %v1637_v17  ;;  %1713 = vmatmul.mubr.bf16.vlgmr.msra.gmra.mrb[36].mxu1 %v1637_v17 }
 0x7c7   :  { %2024 = vmatprep.mubr.bf16.mxu0 %v3797_v7  ;;  %1993 = vmatpush1.bf16.msra.mxu0 %v2614_v12  ;;  %v2622_v7 = vld [vmem:[#allocation6 + $0x30] ss:$12 sps:$4 sm:$0xff]  }
 0x7c8   :  { %2499 = vmatpush3.bf16.msra.mxu1 %v2617_v22  ;;  %1994 = vmatprep.subr.bf16.mxu0 %v2620_v25 }
 0x7c9   :  { %2500 = vmatprep.subr.bf16.mxu1 %v3055_v24  ;;  %2514 = vmatprep.mubr.msk.bf16.mxu1 %vm3056_vm3, %v3055_v24 }
 0x7cb   :  { %1995 = vmatpush1.bf16.msra.mxu0 %v2618_v33 }
 0x7cc   :  { %2501 = vmatpush3.bf16.msra.mxu1 %v2621_v34  ;;  %1996 = vmatprep.subr.bf16.mxu0 %v2624_v35 }
 0x7cd   :  { %2502 = vmatprep.subr.bf16.mxu1 %v3055_v24 }
 0x7cf   :  { %1997 = vmatpush1.bf16.msra.mxu0 %v2622_v7 }
 0x7d0   :  { %2503 = vmatpush3.bf16.msra.mxu1 %v2625_v36  ;;  %1998 = vmatprep.subr.bf16.mxu0 %v2628_v38  ;;  %v1789_v38 = vrot.slane %v3697_v9, 7 }
 0x7d1   :  { %2504 = vmatprep.subr.bf16.mxu1 %v3055_v24 }
 0x7d3   :  { %1999 = vmatpush1.bf16.msra.mxu0 %v2626_v37 }
 0x7d4   :  { %2505 = vmatpush3.bf16.msra.mxu1 %v2629_v40  ;;  %2000 = vmatprep.subr.bf16.mxu0 %v2632_v41 }
 0x7d5   :  { %2506 = vmatprep.subr.bf16.mxu1 %v3055_v24 }
 0x7d7   :  { %2001 = vmatpush1.bf16.msra.mxu0 %v2630_v42  ;;  %v1790_v42 = vrot.slane %v3699_v55, 7 }
 0x7d8   :  { %2507 = vmatpush3.bf16.msra.mxu1 %v2633_v60  ;;  %2002 = vmatprep.subr.bf16.mxu0 %v2636_v54 }
 0x7d9   :  { %2508 = vmatprep.subr.bf16.mxu1 %v3055_v24 }
 0x7db   :  { %2003 = vmatpush1.bf16.msra.mxu0 %v2634_v47 }
 0x7dc   :  { %2509 = vmatpush3.bf16.msra.mxu1 %v2637_v53  ;;  %2004 = vmatprep.subr.bf16.mxu0 %v2640_v58 }
 0x7dd   :  { %2510 = vmatprep.subr.bf16.mxu1 %v3055_v24 }
 0x7df   :  { %2005 = vmatpush1.bf16.msra.mxu0 %v2638_v3 }
 0x7e0   :  { %2511 = vmatpush3.bf16.msra.mxu1 %v2641_v18  ;;  %2006 = vmatprep.subr.bf16.mxu0 %v2644_v10 }
 0x7e1   :  { %2512 = vmatprep.subr.bf16.mxu1 %v3055_v24 }
 0x7e3   :  { %2007 = vmatpush1.bf16.msra.mxu0 %v2642_v49 }
 0x7e4   :  { %2513 = vmatpush3.bf16.msra.mxu1 %v2645_v52  ;;  %2530 = vmatprep.subr.bf16.mxu0 %v3055_v24 }
 0x7e5   :  { %2518 = vmatprep.subr.bf16.mxu1 %v3055_v24 }
 0x899   :  { %v1673_v19 = vpop.f32.mrb[28].mxu0  ;;  %v1714_v29 = vpop.f32.mrb[36].mxu1 }
 0x89a   :  { %v1725_v31 = vrot.slane %v1673_v19, 1  ;;  %v1729_v43 = vrot.slane %v1673_v19, 2  ;;  %v1675_v57 = vpop.f32.mrb[29].mxu0  ;;  %v1716_v39 = vpop.f32.mrb[37].mxu1  ;;  %v1727_v50 = vrot.slane %v1714_v29, 1  ;;  %v1731_v1 = vrot.slane %v1714_v29, 2 }
 0x89b   :  { %v1726_v46 = vrot.slane %v1675_v57, 1  ;;  %v1730_v56 = vrot.slane %v1675_v57, 2  ;;  %v1677_v44 = vpop.f32.mrb[30].mxu0  ;;  %v1718_v45 = vpop.f32.mrb[38].mxu1  ;;  %v1728_v32 = vrot.slane %v1716_v39, 1  ;;  %v1732_v48 = vrot.slane %v1716_v39, 2 }
 0x89c   :  { %v1741_v23 = vadd.f32 %v1725_v31, %v3301_v61  ;;  %v1745_v51 = vadd.f32 %v1729_v43, %v3305_v0  ;;  %v1678_v27 = vpop.f32.mrb[31].mxu0  ;;  %v1719_v11 = vpop.f32.mrb[39].mxu1  ;;  %v3734_v43 = vld [vmem:[%s3788_s5] sm:$0x7]  ;;  %v3798_v57 = vsub.s32 1, %v3141_v4 }
 0x89d   :  { %v1742_v16 = vadd.f32 %v1726_v46, %v3303_v62  ;;  %v1746_v26 = vadd.f32 %v1730_v56, %v3308_v6  ;;  %v1744_v61 = vadd.f32 %v1728_v32, %v3319_v2  ;;  %v1748_v0 = vadd.f32 %v1732_v48, %v3323_v14 }
 0x89e   :  { %v2435_v28 = vmul.f32 -1.442695, %v1741_v23  ;;  %v2436_v59 = vmul.f32 -1.442695, %v1745_v51  ;;  %v1743_v62 = vadd.f32 %v1727_v50, %v3317_v63  ;;  %v1747_v6 = vadd.f32 %v1731_v1, %v3321_v5 }
 0x89f   :  { %v2437_v30 = vmul.f32 -1.442695, %v1742_v16  ;;  %v2438_v15 = vmul.f32 -1.442695, %v1746_v26  ;;  %v2439_v21 = vmul.f32 -1.442695, %v1744_v61  ;;  %v1850_v39 = vrot.slane %v3734_v43, %v3798_v57 }
 0x8a0   :  { %2878 = vpow2.f32 %v2435_v28  ;;  %v2440_v8 = vmul.f32 -1.442695, %v1748_v0  ;;  %v3799_v11 = vsub.s32 0, %v3141_v4 }
 0x8a1   :  { %2880 = vpow2.f32 %v2436_v59 }
 0x8a2   :  { %2882 = vpow2.f32 %v2437_v30  ;;  %v1846_v16 = vrot.slane %v3734_v43, %v3799_v11  ;;  %v2652_v11 = vld [vmem:[#allocation8 + $0x30] sm:$0xff]  }
 0x8a3   :  { %2884 = vpow2.f32 %v2438_v15 }
 0x8a4   :  { %2886 = vtanh.f32 %v1743_v62 }
 0x8a5   :  { %2888 = vtanh.f32 %v1747_v6 }
 0x8a6   :  { %2890 = vpow2.f32 %v2439_v21 }
 0x8a7   :  { %2892 = vpow2.f32 %v2440_v8 }
 0x8aa   :  { %v2879_v13 = vpop.eup %2878 }
 0x8ab   :  { %v2881_v17 = vpop.eup %2880  ;;  %v1755_v20 = vadd.f32 1.0, %v2879_v13 }
 0x8ac   :  { %v2883_v12 = vpop.eup %2882  ;;  %v1756_v22 = vadd.f32 1.0, %v2881_v17 }
 0x8ad   :  { %v2885_v25 = vpop.eup %2884  ;;  %2894 = vrcp.f32 %v1755_v20  ;;  %v1767_v2 = vadd.f32 1.0, %v2883_v12 }
 0x8ae   :  { %2896 = vrcp.f32 %v1756_v22  ;;  %v1768_v14 = vadd.f32 1.0, %v2885_v25  ;;  %v2887_v63 = vpop.eup %2886 }
 0x8af   :  { %2898 = vrcp.f32 %v1767_v2  ;;  %v2889_v5 = vpop.eup %2888 }
 0x8b0   :  { %2900 = vrcp.f32 %v1768_v14  ;;  %v2891_v33 = vpop.eup %2890 }
 0x8b1   :  { %v2893_v34 = vpop.eup %2892  ;;  %v1781_v37 = vadd.f32 1.0, %v2891_v33 }
 0x8b2   :  { %v1782_v60 = vadd.f32 1.0, %v2893_v34 }
 0x8b3   :  { %2902 = vrcp.f32 %v1781_v37 }
 0x8b4   :  { %2904 = vrcp.f32 %v1782_v60 }
 0x8b7   :  { %v2895_v35 = vpop.eup %2894 }
 0x8b8   :  { %v2897_v7 = vpop.eup %2896  ;;  %v1795_v36 = vmul.f32 %v2895_v35, %v2887_v63 }
 0x8b9   :  { %v2899_v40 = vpop.eup %2898  ;;  %v1796_v41 = vmul.f32 %v2897_v7, %v2889_v5 }
 0x8ba   :  { %v2901_v54 = vpop.eup %2900  ;;  %v1793_v47 = vmul.f32 %v2899_v40, %v1789_v38 }
 0x8bb   :  { %v1794_v53 = vmul.f32 %v2901_v54, %v1790_v42 }
 0x8bc   :  { %v1797_v58 = vadd.f32 %v1795_v36, %v1793_v47  ;;  %v2646_v36 = vld [vmem:[#allocation8] sm:$0xff]   ;;  %v2647_v47 = vld [vmem:[#allocation8 + $0x8] sm:$0xff]  }
 0x8bd   :  { %v1798_v3 = vadd.f32 %v1796_v41, %v1794_v53  ;;  %v2903_v18 = vpop.eup %2902 }
 0x8be   :  { %2906 = vtanh.f32 %v1797_v58  ;;  %v2905_v10 = vpop.eup %2904 }
 0x8bf   :  { %2908 = vtanh.f32 %v1798_v3 }
 0x8c8   :  { %v2907_v49 = vpop.eup %2906 }
 0x8c9   :  { %v2909_v52 = vpop.eup %2908  ;;  %v1801_v9 = vmul.f32 %v2907_v49, %v2903_v18  ;;  %v2648_v49 = vld [vmem:[#allocation8 + $0x10] sm:$0xff]  }
 0x8ca   :  { %v1802_v19 = vmul.f32 %v2909_v52, %v2905_v10 }
 0x8cb   :  { %1803 = vst [vmem:[#allocation2] sm:$0x80] %v1801_v9 }
 0x8cc   :  { %1804 = vst [vmem:[#allocation2 + $0x8] sm:$0x80] %v1802_v19 }
 0x8d2   :  { %v1805_v29 = vld [vmem:[#allocation2] sm:$0xff] }
 0x8d3   :  { %v1806_v55 = vld [vmem:[#allocation2 + $0x8] sm:$0xff] }
 0x8d4   :  { %v2475_v31 = vpack.c.bf16 %v1806_v55, %v1805_v29  ;;  %v2649_v55 = vld [vmem:[#allocation8 + $0x18] sm:$0xff]  }
 0x8d6   :  { %2025 = vmatmul.mubr.bf16.vlgmr.msra.gmra.mrb[32].mxu0 %v2475_v31  ;;  %2515 = vmatmul.mubr.bf16.vlgmr.msra.gmra.mrb[40].mxu1 %v2475_v31 }
 0x8d7   :  { %2520 = vmatprep.mubr.msk.bf16.mxu1 %vm3056_vm3, %v3055_v24  ;;  %2546 = vmatprep.mubr.msk.bf16.mxu0 %vm3056_vm3, %v3055_v24 }
 0x8d8   :  { %2531 = vmatpush3.bf16.msra.mxu0 %v2646_v36 }
 0x8d9   :  { %2532 = vmatprep.subr.bf16.mxu0 %v3055_v24 }
 0x8dc   :  { %2533 = vmatpush3.bf16.msra.mxu0 %v2647_v47 }
 0x8dd   :  { %2534 = vmatprep.subr.bf16.mxu0 %v3055_v24 }
 0x8e0   :  { %2535 = vmatpush3.bf16.msra.mxu0 %v2648_v49 }
 0x8e1   :  { %2536 = vmatprep.subr.bf16.mxu0 %v3055_v24 }
 0x8e4   :  { %2537 = vmatpush3.bf16.msra.mxu0 %v2649_v55 }
 0x8e5   :  { %2538 = vmatprep.subr.bf16.mxu0 %v3055_v24 }
 0x9a9   :  { %v2026_v46 = vpop.f32.mrb[32].mxu0  ;;  %v3739_v56 = vpop.f32.mrb[40].mxu1 }
 0x9aa   :  { %v2028_v44 = vpop.f32.mrb[33].mxu0  ;;  %v2516_v45 = vpop.f32.mrb[41].mxu1  ;;  %v2027_v30 = vadd.f32 %v2026_v46, %v1846_v16  ;;  %v2650_v46 = vld [vmem:[#allocation8 + $0x20] sm:$0xff]  }
 0x9ab   :  { %v2029_v23 = vadd.f32 %v2028_v44, %v1850_v39  ;;  %v2030_v51 = vpop.f32.mrb[34].mxu0  ;;  %v3741_v27 = vpop.f32.mrb[42].mxu1  ;;  %2539 = vmatpush3.bf16.msra.mxu0 %v2650_v46 }
 0x9ac   :  { %v2032_v26 = vpop.f32.mrb[35].mxu0  ;;  %v2517_v28 = vpop.f32.mrb[43].mxu1  ;;  %v2076_v32 = vpack.c.bf16 %v2027_v30, %v2027_v30  ;;  %v2031_v50 = vadd.f32 %v2030_v51, %v1846_v16  ;;  %2540 = vmatprep.subr.bf16.mxu0 %v3055_v24  ;;  %v2653_v16 = vld [vmem:[#allocation8 + $0x38] sm:$0xff]  }
 0x9ad   :  { %v2078_v59 = vpack.c.bf16 %v2029_v23, %v2029_v23  ;;  %v2033_v15 = vadd.f32 %v2032_v26, %v1850_v39  ;;  %v2651_v23 = vld [vmem:[#allocation8 + $0x28] sm:$0xff]   ;;  %v3800_v26 = vsub.s32 2, %v3141_v4 }
 0x9ae   :  { %v2077_v1 = vpack.c.bf16 %v2031_v50, %v2031_v50 }
 0x9af   :  { %2519 = vmatpush3.bf16.xpose.msra.mxu1 %v2078_v59  ;;  %v2079_v48 = vpack.c.bf16 %v2033_v15, %v2033_v15  ;;  %2541 = vmatpush3.bf16.msra.mxu0 %v2651_v23  ;;  %v1854_v28 = vrot.slane %v3734_v43, %v3800_v26 }
 0x9b0   :  { %2524 = vmatprep.subr.bf16.mxu1 %v3055_v24  ;;  %2542 = vmatprep.subr.bf16.mxu0 %v3055_v24 }
 0x9b1   :  { %v2070_v59 = vadd.f32 %v3739_v56, %v1854_v28  ;;  %v2073_v50 = vadd.f32 %v3741_v27, %v1854_v28  ;;  %v2466_v27 = vld [vmem:[%s3790_s7] ss:$0 sm:$0xff] }
 0x9b3   :  { %2543 = vmatpush3.bf16.msra.mxu0 %v2652_v11 }
 0x9b4   :  { %2544 = vmatprep.subr.bf16.mxu0 %v3055_v24 }
 0x9b6   :  { %2521 = vmatmul.mubr.bf16.vlgmr.msra.gmra.mrb[44].mxu1 %v2076_v32 }
 0x9b7   :  { %2525 = vmatpush3.bf16.xpose.msra.mxu1 %v2079_v48  ;;  %2526 = vmatprep.mubr.msk.bf16.mxu1 %vm3056_vm3, %v3055_v24 }
 0x9b8   :  { %2545 = vmatpush3.bf16.msra.mxu0 %v2653_v16 }
 0x9be   :  { %2527 = vmatmul.mubr.bf16.vlgmr.msra.gmra.mrb[48].mxu1 %v2077_v1 }
 0xa89   :  { %v2114_v61 = vpop.f32.mrb[44].mxu1 }
 0xa8a   :  { %v2522_v0 = vpop.f32.mrb[45].mxu1  ;;  %v2161_v62 = vsel %vm2160_vm4, %v2114_v61, -inf }
 0xa8b   :  { %2162 = vmax.xlane.f32.xlu0 %v2161_v62  ;;  %v2117_v6 = vpop.f32.mrb[46].mxu1 }
 0xa8c   :  { %v2523_v21 = vpop.f32.mrb[47].mxu1 }
 0xa91   :  { %v2154_v8 = vpop.f32.mrb[48].mxu1 }
 0xa92   :  { %v2528_v13 = vpop.f32.mrb[49].mxu1  ;;  %v2164_v17 = vsel %vm2160_vm4, %v2154_v8, -inf }
 0xa93   :  { %2165 = vmax.xlane.f32.xlu0 %v2164_v17  ;;  %v2157_v20 = vpop.f32.mrb[50].mxu1 }
 0xa94   :  { %v2529_v12 = vpop.f32.mrb[51].mxu1 }
 0xb18   :  { %v2163_v22 = vpop.xlane.xlu0 %2162 }
 0xb19   :  { %v2167_v25 = vsub.f32 %v2114_v61, %v2163_v22 }
 0xb1b   :  { %v2169_v2 = vmul.f32 1.442695, %v2167_v25 }
 0xb1d   :  { %2910 = vpow2.f32 %v2169_v2 }
 0xb20   :  { %v2166_v14 = vpop.xlane.xlu0 %2165 }
 0xb21   :  { %v2168_v63 = vsub.f32 %v2154_v8, %v2166_v14 }
 0xb23   :  { %v2171_v5 = vmul.f32 1.442695, %v2168_v63 }
 0xb25   :  { %2912 = vpow2.f32 %v2171_v5 }
 0xb27   :  { %v2911_v33 = vpop.eup %2910 }
 0xb28   :  { %v2173_v34 = vsel %vm2160_vm4, %v2911_v33, 0.0 }
 0xb29   :  { %2174 = vadd.xlane.f32.xlu1 %v2173_v34 }
 0xb2f   :  { %v2913_v35 = vpop.eup %2912 }
 0xb30   :  { %v2176_v7 = vsel %vm2160_vm4, %v2913_v35, 0.0 }
 0xb31   :  { %2177 = vadd.xlane.f32.xlu1 %v2176_v7 }
 0xbb6   :  { %v2175_v38 = vpop.xlane.xlu1 %2174 }
 0xbb7   :  { %2914 = vrcp.f32 %v2175_v38 }
 0xbbe   :  { %v2178_v37 = vpop.xlane.xlu1 %2177 }
 0xbbf   :  { %2916 = vrcp.f32 %v2178_v37 }
 0xbc1   :  { %v2915_v40 = vpop.eup %2914 }
 0xbc2   :  { %v2181_v41 = vmul.f32 %v2915_v40, %v2911_v33 }
 0xbc4   :  { %v2183_v42 = vsel %vm2160_vm4, %v2181_v41, 0.0 }
 0xbc5   :  { %v2184_v60 = vrot.slane %v2183_v42, 4 }
 0xbc7   :  { %v2185_v54 = vadd.f32 %v2184_v60, %v2183_v42 }
 0xbc9   :  { %v2917_v53 = vpop.eup %2916  ;;  %v2186_v58 = vrot.slane %v2185_v54, 2 }
 0xbca   :  { %v2182_v3 = vmul.f32 %v2917_v53, %v2913_v35 }
 0xbcb   :  { %v2187_v18 = vadd.f32 %v2186_v58, %v2185_v54 }
 0xbcc   :  { %v2190_v10 = vsel %vm2160_vm4, %v2182_v3, 0.0 }
 0xbcd   :  { %v2188_v52 = vrot.slane %v2187_v18, 1  ;;  %v2191_v9 = vrot.slane %v2190_v10, 4 }
 0xbcf   :  { %v2189_v19 = vadd.f32 %v2188_v52, %v2187_v18  ;;  %v2192_v29 = vadd.f32 %v2191_v9, %v2190_v10 }
 0xbd1   :  { %v2197_v31 = vmul.f32 0.125, %v2189_v19  ;;  %v2193_v57 = vrot.slane %v2192_v29, 2 }
 0xbd3   :  { %2200 = vbcast.lane.b32.xlu0 %v2197_v31, 256  ;;  %v2194_v39 = vadd.f32 %v2193_v57, %v2192_v29 }
 0xbd5   :  { %v2195_v44 = vrot.slane %v2194_v39, 1 }
 0xbd7   :  { %v2196_v45 = vadd.f32 %v2195_v44, %v2194_v39 }
 0xbd9   :  { %v2198_v51 = vmul.f32 0.125, %v2196_v45 }
 0xbdb   :  { %2203 = vbcast.lane.b32.xlu1 %v2198_v51, 256 }
 0xc45   :  { %v2201_v30 = vpop.permute.xlu0 %2200 }
 0xc46   :  { %v2205_v15 = vmul.f32 %v2201_v30, %v2070_v59 }
 0xc48   :  { %v2207_v32 = vrot.slane %v2205_v15, 4 }
 0xc4a   :  { %v2208_v48 = vadd.f32 %v2207_v32, %v2205_v15 }
 0xc4c   :  { %v2209_v1 = vrot.slane %v2208_v48, 2 }
 0xc4d   :  { %v2204_v61 = vpop.permute.xlu1 %2203 }
 0xc4e   :  { %v2210_v0 = vadd.f32 %v2209_v1, %v2208_v48  ;;  %v2206_v62 = vmul.f32 %v2204_v61, %v2073_v50 }
 0xc50   :  { %v2213_v6 = vrot.slane %v2206_v62, 4  ;;  %v2211_v21 = vrot.slane %v2210_v0, 1 }
 0xc52   :  { %v2214_v24 = vadd.f32 %v2213_v6, %v2206_v62  ;;  %v2212_v13 = vadd.f32 %v2211_v21, %v2210_v0 }
 0xc54   :  { %v2215_v8 = vrot.slane %v2214_v24, 2  ;;  %v2219_v43 = vpack.c.bf16 %v2212_v13, %v2212_v13 }
 0xc56   :  { %v2216_v4 = vadd.f32 %v2215_v8, %v2214_v24  ;;  %v2246_v12 = vunpack.c.l.b16 %v2219_v43 }
 0xc58   :  { %v2217_v17 = vrot.slane %v2216_v4, 1 }
 0xc5a   :  { %v2218_v20 = vadd.f32 %v2217_v17, %v2216_v4 }
 0xc5c   :  { %v2220_v56 = vpack.c.bf16 %v2218_v20, %v2218_v20 }
 0xc5e   :  { %v2247_v22 = vunpack.c.l.b16 %v2220_v56 }
 0xc60   :  { %v2248_v25 = vsel %vm578_vm2, %v2247_v22, %v2246_v12 }
 0xc61   :  { %v2249_v2 = vpack.c.b16 %v2248_v25, %v2248_v25 }
 0xc63   :  { %2547 = vmatmul.mubr.bf16.vlgmr.msra.gmra.mrb[36].mxu0 %v2249_v2 }
 0xd36   :  { %v2333_v14 = vpop.f32.mrb[36].mxu0 }
 0xd37   :  { %v2334_v63 = vadd.f32 %v2466_v27, %v2333_v14  ;;  %v2548_v5 = vpop.f32.mrb[37].mxu0 }
 0xd38   :  { %v2336_v33 = vpop.f32.mrb[38].mxu0 }
 0xd39   :  { %2339 = vst [vmem:[#allocation9] sm:$0x3] %v2334_v63  ;;  %v2549_v34 = vpop.f32.mrb[39].mxu0 }
 0xd3a   :  { %3027 = shalt.err (!%p3024_p0)
}
 0xd3b   :  { %s3028_s7 = scalar_lea.hbm %s3791_s8, 32 }
 0xd3c   :  { %p3029_p1 = scmp.ne.s32.totalorder %s3791_s8, %s3028_s7  ;;  %p3032_p2 = scmp.lt.u32.totalorder %s3028_s7, %s3791_s8 }
 0xd3e   :  { %p3034_p3 = pnand %p3032_p2, %p3029_p1 }
 0xd40   :  { %3037 = shalt.err (!%p3034_p3)
}
 0xd41   :  { %2349 = dma.vmem_to_hbm [thread:$0]  %s2347_s4, 32, %s3791_s8, [#allocation5]  }
 0xd42   :  { %3042 = dma.done.wait [#allocation5], 32  }
 0xd43   :  { %3043 = vsyncadd [#allocation5], 4294967264 }
 0xd44   :  { %2353 = vsyncpa [#allocation4], 1 }
 0xd45   :  { %2354 = vsyncpa [#allocation7], 1 }
 0xd46   :  { %2355 = vsyncpa [#allocation5], 1 }

</bundles_post_ra>
